<compile_context>
chip_gen: v5e
topology: v5e:2x2
jax: 0.10.0
libtpu: 0.0.40
codegen_flags: <defaults>
</compile_context>

<pallas_src>
import functools
from types import SimpleNamespace as NS

import jax
import jax.numpy as jnp
from jax import lax
from jax.experimental import pallas as pl
from jax.experimental.pallas import tpu as pltpu


_NUM_LANES = 128
_SUBLANES = 8
_VMEM_LIMIT = 48 * 1024 * 1024       # <= v7x physical-VMEM headroom; safe on v5e/v6e
_BLOCK_ROWS_CAP = 2048               # (2048,128) f32 x 3 inputs x 2 bufs ~= 6.3 MiB

_VMEM = pl.BlockSpec(memory_space=pltpu.MemorySpace.VMEM)
_SMEM = pl.BlockSpec(memory_space=pltpu.MemorySpace.SMEM)

# Lane layout of Kernel B's (1, 128) output vector.
(_SLOT_SIM, _SLOT_CONTR, _SLOT_CLIP, _SLOT_GRL, _SLOT_GRL_ACC, _SLOT_STYLE_CE,
 _SLOT_STYLE_ACC, _SLOT_CLS, _SLOT_STYLE_CYC, _SLOT_CONTENT_CYC) = range(10)


def _cdiv(a, b):
    return -(-a // b)


def _round_up(x, m):
    return ((x + m - 1) // m) * m


# ----------------------------------------------------------------------------
# Small helpers traced inside kernels (pure jnp/lax, f32 math unless noted)
# ----------------------------------------------------------------------------
def _l2_normalize_rows(x, eps=1e-12):
    # x / max(||x||, eps) with one EUP rsqrt instead of sqrt + divide.
    return x * lax.rsqrt(jnp.maximum(jnp.sum(x * x, axis=-1, keepdims=True),
                                     eps * eps))


def _contrastive_loss(c, a, margin):
    """ContentContrastiveLoss: pairwise L2 distances of normalized rows + hinge."""
    N = c.shape[0]
    cn = _l2_normalize_rows(c).astype(jnp.bfloat16)
    an = _l2_normalize_rows(a).astype(jnp.bfloat16)
    # For unit rows: ||cn_i - an_j||^2 == 2 - 2 <cn_i, an_j>.  bf16 MXU, f32 acc.
    dot = lax.dot_general(cn, an, (((1,), (1,)), ((), ())),
                          preferred_element_type=jnp.float32)          # (N, N)
    d2 = jnp.maximum(2.0 - 2.0 * dot, 0.0)
    row = lax.broadcasted_iota(jnp.int32, (N, N), 0)
    col = lax.broadcasted_iota(jnp.int32, (N, N), 1)
    is_diag = row == col
    scores = jnp.sqrt(d2)                               # only needed off-diagonal
    cost_s = jnp.where(is_diag, 0.0, jnp.maximum(margin - scores, 0.0))
    diag_sq = jnp.where(is_diag, d2, 0.0)               # diag^2 == d2, no sqrt needed
    return (jnp.sum(cost_s * cost_s) + jnp.sum(diag_sq)) / (2.0 * N)


def _clip_loss(img, lat, scale):
    """CLIP loss from a SINGLE (N,N) logits matrix (row + column LSE)."""
    img_n = _l2_normalize_rows(img).astype(jnp.bfloat16)
    lat_n = _l2_normalize_rows(lat).astype(jnp.bfloat16)
    L = scale * lax.dot_general(img_n, lat_n, (((1,), (1,)), ((), ())),
                                preferred_element_type=jnp.float32)    # (N, N)
    N = L.shape[0]
    row = lax.broadcasted_iota(jnp.int32, (N, N), 0)
    col = lax.broadcasted_iota(jnp.int32, (N, N), 1)
    is_diag = row == col
    # image direction: CE over rows of L
    diag_r = jnp.sum(jnp.where(is_diag, L, 0.0), axis=1, keepdims=True)   # (N, 1)
    m_r = jnp.max(L, axis=1, keepdims=True)
    lse_r = jnp.log(jnp.sum(jnp.exp(L - m_r), axis=1, keepdims=True)) + m_r
    ce_img = jnp.mean(lse_r - diag_r)
    # latent direction: CE over rows of L^T == columns of L (axis-0 LSE, no 2nd matmul)
    diag_c = jnp.sum(jnp.where(is_diag, L, 0.0), axis=0, keepdims=True)   # (1, N)
    m_c = jnp.max(L, axis=0, keepdims=True)
    lse_c = jnp.log(jnp.sum(jnp.exp(L - m_c), axis=0, keepdims=True)) + m_c
    ce_lat = jnp.mean(lse_c - diag_c)
    return 0.5 * (ce_img + ce_lat)


def _ce_and_argmax_acc(logits, labels):
    """CrossEntropyLoss(mean) + accuracy with torch.max first-max tie-breaking."""
    B, C = logits.shape
    cls_ids = lax.broadcasted_iota(jnp.int32, (B, C), 1)
    onehot = cls_ids == labels                                  # labels: (B, 1)
    m = jnp.max(logits, axis=-1, keepdims=True)
    lse = jnp.log(jnp.sum(jnp.exp(logits - m), axis=-1, keepdims=True)) + m
    logit_at_label = jnp.sum(jnp.where(onehot, logits, 0.0), axis=-1, keepdims=True)
    ce = jnp.mean(lse - logit_at_label)
    argmax = jnp.min(jnp.where(logits == m, cls_ids, C), axis=-1, keepdims=True)
    acc = jnp.sum((argmax == labels).astype(jnp.float32)) / float(B)
    return ce, acc


def _l2_softmax_loss(x):
    C = x.shape[1]
    m = jnp.max(x, axis=-1, keepdims=True)
    e = jnp.exp(x - m)
    p = e / jnp.sum(e, axis=-1, keepdims=True)
    return jnp.mean((p - 1.0 / C) ** 2)


def _cosine_cycle_loss(x1, x2):
    dot = jnp.sum(x1 * x2, axis=-1, keepdims=True)
    n1sq = jnp.sum(x1 * x1, axis=-1, keepdims=True)
    n2sq = jnp.sum(x2 * x2, axis=-1, keepdims=True)
    cos = dot * lax.rsqrt(jnp.maximum(n1sq * n2sq, 1e-16))   # F.cosine_similarity eps
    return jnp.mean(1.0 - cos)    # cosine_embedding_loss, target = +1


def _set_lane(vec, lanes, slot, value):
    return jnp.where(lanes == slot, value, vec)


# ----------------------------------------------------------------------------
# Kernel A: both reconstruction MSE losses, tiled over rows of the flat images
# ----------------------------------------------------------------------------
def _recon_pair_kernel(oc_ref, oa_ref, lab_ref, out_ref, *,
                       block_rows, sub, rows_valid, steps_per_core, needs_mask):
    i = pl.program_id(1)

    @pl.when(i == 0)
    def _init():
        out_ref[...] = jnp.zeros_like(out_ref)

    lab = lab_ref[...].astype(jnp.float32)              # read label tile ONCE
    dc = oc_ref[...].astype(jnp.float32) - lab
    da = oa_ref[...].astype(jnp.float32) - lab
    sq_c = dc * dc
    sq_a = da * da

    if needs_mask:
        # Logical (unclamped) block index -> mask rows past the real array.
        start = (pl.program_id(0) * steps_per_core + i) * block_rows
        rid = start + lax.broadcasted_iota(jnp.int32, (block_rows, 1), 0)
        valid = rid < rows_valid
        sq_c = jnp.where(valid, sq_c, 0.0)
        sq_a = jnp.where(valid, sq_a, 0.0)

    if sub == _SUBLANES:
        # (block_rows//8, 8, 128) sum over leading dim: pure vreg-wise VPU adds,
        # cross-sublane reduction deferred to the wrapper.
        part_c = sq_c.reshape(block_rows // _SUBLANES, _SUBLANES, _NUM_LANES).sum(axis=0)
        part_a = sq_a.reshape(block_rows // _SUBLANES, _SUBLANES, _NUM_LANES).sum(axis=0)
    else:
        part_c = jnp.sum(sq_c, axis=0, keepdims=True)
        part_a = jnp.sum(sq_a, axis=0, keepdims=True)

    out_ref[0, :sub, :] += part_c
    out_ref[0, sub:, :] += part_a


def recon_pair_loss(out_content, out_audio, label, weight):
    """Returns (w * MSE(out_content, label), w * MSE(out_audio, label))."""
    n = int(label.size)
    n128 = _round_up(n, _NUM_LANES)          # minimal pad: multiple of 128 elements only
    rows = n128 // _NUM_LANES

    def prep(x):
        flat = x.reshape(-1)
        if n128 != n:
            flat = jnp.pad(flat, (0, n128 - n))   # zero pads contribute 0 to the SSE
        return flat.reshape(rows, _NUM_LANES)

    block_rows = min(_BLOCK_ROWS_CAP, rows)       # rows<cap => full-dim single block
    num_blocks = _cdiv(rows, block_rows)
    cores = 2 if num_blocks >= 2 else 1           # 2-TC sharding on v7x; serial elsewhere
    steps = _cdiv(num_blocks, cores)
    needs_mask = (cores * steps * block_rows) != rows
    sub = _SUBLANES if block_rows % _SUBLANES == 0 else 1

    oc, oa, lb = prep(out_content), prep(out_audio), prep(label)

    def in_map(c, i):
        return (jnp.minimum(c * steps + i, num_blocks - 1), 0)   # clamp overshoot blocks

    def out_map(c, i):
        return (c, 0, 0)                                          # per-core accumulator

    bytes_per = (out_content.dtype.itemsize + out_audio.dtype.itemsize
                 + label.dtype.itemsize)
    cost = pl.CostEstimate(flops=8 * n, transcendentals=0,
                           bytes_accessed=n * bytes_per
                           + cores * 2 * sub * _NUM_LANES * 4)

    out = pl.pallas_call(
        functools.partial(_recon_pair_kernel, block_rows=block_rows, sub=sub,
                          rows_valid=rows, steps_per_core=steps,
                          needs_mask=needs_mask),
        out_shape=jax.ShapeDtypeStruct((cores, 2 * sub, _NUM_LANES), jnp.float32),
        grid_spec=pltpu.PrefetchScalarGridSpec(
            num_scalar_prefetch=0,
            grid=(cores, steps),
            in_specs=[pl.BlockSpec((block_rows, _NUM_LANES), in_map)] * 3,
            out_specs=pl.BlockSpec((1, 2 * sub, _NUM_LANES), out_map)),
        compiler_params=pltpu.CompilerParams(
            dimension_semantics=("parallel", "arbitrary"),
            vmem_limit_bytes=_VMEM_LIMIT),
        cost_estimate=cost,
    )(oc, oa, lb)

    scale = float(weight) / float(n)
    content = jnp.sum(out[:, :sub, :]) * scale
    audio = jnp.sum(out[:, sub:, :]) * scale
    return content, audio


# ----------------------------------------------------------------------------
# Kernel B: all remaining (small-tensor) losses fused into one call
# ----------------------------------------------------------------------------
def _fused_small_losses_kernel(*refs, cfg, has_id, names):
    out_ref = refs[-1]
    r = dict(zip(names, refs[:-1]))
    f32 = jnp.float32
    lanes = lax.broadcasted_iota(jnp.int32, (1, _NUM_LANES), 1)
    out = jnp.zeros((1, _NUM_LANES), f32)

    loaded = {}

    def get(name):          # load each VMEM ref (and cast to f32) at most once
        if name not in loaded:
            loaded[name] = r[name][...].astype(f32)
        return loaded[name]

    if cfg.content_code_sim_loss.use:
        d = get('cc_bt') - get('af_bt')
        out = _set_lane(out, lanes, _SLOT_SIM,
                        cfg.content_code_sim_loss.w * (jnp.sum(d * d) / float(d.size)))

    if cfg.content_contrastive_loss.use:
        out = _set_lane(out, lanes, _SLOT_CONTR,
                        cfg.content_contrastive_loss.w *
                        _contrastive_loss(get('cc_bt'), get('af_bt'),
                                          float(cfg.content_contrastive_loss.margin)))

    if cfg.content_clip_loss.use:
        out = _set_lane(out, lanes, _SLOT_CLIP,
                        cfg.content_clip_loss.w *
                        _clip_loss(get('cc_nd'), get('af_nd'), r['scale'][0, 0]))

    if cfg.content_grl_loss.use and has_id:
        ce, acc = _ce_and_argmax_acc(get('grl'), r['lab'][...])
        out = _set_lane(out, lanes, _SLOT_GRL, cfg.content_grl_loss.w * ce)
        out = _set_lane(out, lanes, _SLOT_GRL_ACC, acc)

    if cfg.style_class_loss.use and has_id:
        ce, acc = _ce_and_argmax_acc(get('sty'), r['lab'][...])
        out = _set_lane(out, lanes, _SLOT_STYLE_CE, cfg.style_class_loss.w * ce)
        out = _set_lane(out, lanes, _SLOT_STYLE_ACC, acc)

    if cfg.content_class_loss.use:
        out = _set_lane(out, lanes, _SLOT_CLS,
                        cfg.content_class_loss.w * _l2_softmax_loss(get('cls')))

    if cfg.style_cycle_loss.use:
        x1, x2 = get('scs'), get('scc')
        if cfg.style_cycle_loss.sim == 'cos':
            v = _cosine_cycle_loss(x1, x2)
        else:  # 'L1'
            v = jnp.mean(jnp.abs(x1 - x2))
        out = _set_lane(out, lanes, _SLOT_STYLE_CYC, cfg.style_cycle_loss.w * v)

    if cfg.content_cycle_loss.use:
        out = _set_lane(out, lanes, _SLOT_CONTENT_CYC,
                        cfg.content_cycle_loss.w *
                        _contrastive_loss(get('ccy_bt'), get('cc_bt'),
                                          float(cfg.content_contrastive_loss.margin)))

    out_ref[...] = out


# ----------------------------------------------------------------------------
# ComposeCycleLoss forward
# ----------------------------------------------------------------------------
def compose_cycle_loss(cfg, output, label, text_label=None, id_label=None):
    (content_code, style_code, audio_feature, out_content, out_audio,
     content_logits, audio_logits, content_grl_logits, style_logits,
     content_cls_logits, audio_cls_logits, style_code_shuffle,
     style_code_cycle, content_code_cycle, logit_scale) = output

    zero = jnp.float32(0.0)

    # --- Kernel A: both recon losses in one tiled pass (label read once) ------
    content_recon_loss, audio_recon_loss = recon_pair_loss(
        out_content, out_audio, label, cfg.recon_loss.w)

    # --- Kernel B: everything else fused, with unused refs dropped ------------
    has_id = id_label is not None
    B, T, D = content_code.shape
    N = B * T

    use_grl = cfg.content_grl_loss.use and has_id
    use_style_cls = cfg.style_class_loss.use and has_id
    need_cc_bt = (cfg.content_code_sim_loss.use or cfg.content_contrastive_loss.use
                  or cfg.content_cycle_loss.use)
    need_af_bt = cfg.content_code_sim_loss.use or cfg.content_contrastive_loss.use

    tensors = {}   # name -> (array, spec); only what the enabled losses touch
    if need_cc_bt:
        tensors['cc_bt'] = (content_code.reshape(B, T * D), _VMEM)
    if need_af_bt:
        tensors['af_bt'] = (audio_feature.reshape(B, T * D), _VMEM)
    if cfg.content_cycle_loss.use:
        tensors['ccy_bt'] = (content_code_cycle.reshape(B, T * D), _VMEM)
    if cfg.content_clip_loss.use:
        tensors['cc_nd'] = (content_code.reshape(N, D), _VMEM)
        tensors['af_nd'] = (audio_feature.reshape(N, D), _VMEM)
        tensors['scale'] = (jnp.asarray(logit_scale, jnp.float32).reshape(1, 1), _SMEM)
    if use_grl or use_style_cls:
        tensors['lab'] = (id_label.astype(jnp.int32).reshape(-1, 1), _VMEM)
    if use_grl:
        tensors['grl'] = (content_grl_logits, _VMEM)
    if use_style_cls:
        tensors['sty'] = (style_logits, _VMEM)
    if cfg.content_class_loss.use:
        tensors['cls'] = (content_cls_logits, _VMEM)
    if cfg.style_cycle_loss.use:
        tensors['scs'] = (style_code_shuffle, _VMEM)
        tensors['scc'] = (style_code_cycle, _VMEM)

    if tensors:
        names = tuple(tensors)
        args = [a for a, _ in tensors.values()]
        specs = [s for _, s in tensors.values()]

        flops = 0
        trans = 0
        if cfg.content_contrastive_loss.use:
            flops += 2 * B * B * T * D + 8 * B * T * D
        if cfg.content_cycle_loss.use:
            flops += 2 * B * B * T * D + 8 * B * T * D
        if cfg.content_clip_loss.use:
            flops += 2 * N * N * D + 8 * N * D
            trans += 2 * N * N
        if use_grl:
            trans += int(content_grl_logits.size)
        if use_style_cls:
            trans += int(style_logits.size)
        if cfg.content_class_loss.use:
            trans += int(content_cls_logits.size)
        bytes_acc = sum(int(a.size) * a.dtype.itemsize for a in args) + 4 * _NUM_LANES
        cost = pl.CostEstimate(flops=int(flops), transcendentals=int(trans),
                               bytes_accessed=int(bytes_acc))

        fused = pl.pallas_call(
            functools.partial(_fused_small_losses_kernel, cfg=cfg, has_id=has_id,
                              names=names),
            out_shape=jax.ShapeDtypeStruct((1, _NUM_LANES), jnp.float32),
            in_specs=specs,
            out_specs=_VMEM,
            compiler_params=pltpu.CompilerParams(vmem_limit_bytes=_VMEM_LIMIT),
            cost_estimate=cost,
        )(*args)
    else:
        fused = jnp.zeros((1, _NUM_LANES), jnp.float32)

    def slot(i, used):
        return fused[0, i] if used else zero

    content_code_sim_loss = slot(_SLOT_SIM, cfg.content_code_sim_loss.use)
    content_contrastive = slot(_SLOT_CONTR, cfg.content_contrastive_loss.use)
    content_clip = slot(_SLOT_CLIP, cfg.content_clip_loss.use)
    content_grl_loss = slot(_SLOT_GRL, use_grl)
    content_class_acc = slot(_SLOT_GRL_ACC, use_grl)
    style_class_loss = slot(_SLOT_STYLE_CE, use_style_cls)
    style_pred_acc = slot(_SLOT_STYLE_ACC, use_style_cls)
    content_class_loss = slot(_SLOT_CLS, cfg.content_class_loss.use)
    style_cycle_loss = slot(_SLOT_STYLE_CYC, cfg.style_cycle_loss.use)
    content_cycle_loss = slot(_SLOT_CONTENT_CYC, cfg.content_cycle_loss.use)

    if cfg.content_ctc_loss.use:
        # TODO(synk): F.ctc_loss forward DP has no clean Pallas equivalent here.
        raise NotImplementedError("CTC loss not implemented in Pallas")
    content_ctc_loss = audio_ctc_loss = zero

    loss = (content_recon_loss + audio_recon_loss + content_code_sim_loss +
            content_contrastive + content_clip + content_grl_loss +
            style_class_loss + content_class_loss + style_cycle_loss +
            content_cycle_loss)

    return {'loss': loss,
            'content_recon_loss': content_recon_loss,
            'audio_recon_loss': audio_recon_loss,
            'content_code_sim_loss': content_code_sim_loss,
            'content_contrastive_loss': content_contrastive,
            'content_clip_loss': content_clip,
            'content_ctc_loss': content_ctc_loss,
            'audio_ctc_loss': audio_ctc_loss,
            'content_grl_loss': content_grl_loss,
            'style_class_loss': style_class_loss,
            'style_pred_acc': style_pred_acc,
            'content_class_loss': content_class_loss,
            'content_class_acc': content_class_acc,
            'style_cycle_loss': style_cycle_loss,
            'content_cycle_loss': content_cycle_loss}


# ----------------------------------------------------------------------------
# Demo
# ----------------------------------------------------------------------------
if __name__ == "__main__":
    cfg = NS(
        recon_loss=NS(w=1.0),
        content_code_sim_loss=NS(use=True, w=0.5),
        content_contrastive_loss=NS(use=True, w=0.5, margin=0.5),
        content_clip_loss=NS(use=True, w=1.0),
        content_ctc_loss=NS(use=False, w=1.0),   # TODO(synk): CTC DP disabled
        content_grl_loss=NS(use=True, w=1.0),
        style_class_loss=NS(use=True, w=1.0),
        content_class_loss=NS(use=True, w=1.0),
        style_cycle_loss=NS(use=True, w=1.0, sim='cos'),
        content_cycle_loss=NS(use=True, w=0.5),
    )

    B, T, D = 2, 8, 32        # feature tensors (B, T, D)
    C_img, H, W = 3, 16, 16   # reconstructed images (NCHW)
    S = 64                    # style-code dim
    N_ID = 10                 # identity classes
    V = 12                    # vocab size (CTC logits, unused since CTC off)

    key = jax.random.PRNGKey(0)
    ks = jax.random.split(key, 16)

    content_code       = jax.random.normal(ks[0],  (B, T, D), jnp.float32)
    style_code         = jax.random.normal(ks[1],  (B, S),    jnp.float32)
    audio_feature      = jax.random.normal(ks[2],  (B, T, D), jnp.float32)
    out_content        = jax.random.normal(ks[3],  (B, C_img, H, W), jnp.float32)
    out_audio          = jax.random.normal(ks[4],  (B, C_img, H, W), jnp.float32)
    content_logits     = jax.random.normal(ks[5],  (B, T, V), jnp.float32)
    audio_logits       = jax.random.normal(ks[6],  (B, T, V), jnp.float32)
    content_grl_logits = jax.random.normal(ks[7],  (B, N_ID), jnp.float32)
    style_logits       = jax.random.normal(ks[8],  (B, N_ID), jnp.float32)
    content_cls_logits = jax.random.normal(ks[9],  (B, N_ID), jnp.float32)
    audio_cls_logits   = jax.random.normal(ks[10], (B, N_ID), jnp.float32)
    style_code_shuffle = jax.random.normal(ks[11], (B, S), jnp.float32)
    style_code_cycle   = jax.random.normal(ks[12], (B, S), jnp.float32)
    content_code_cycle = jax.random.normal(ks[13], (B, T, D), jnp.float32)
    logit_scale        = jnp.float32(1.0 / 0.07)

    label    = jax.random.normal(ks[14], (B, C_img, H, W), jnp.float32)
    id_label = jax.random.randint(ks[15], (B,), 0, N_ID, jnp.int32)

    output = (content_code, style_code, audio_feature, out_content, out_audio,
              content_logits, audio_logits, content_grl_logits, style_logits,
              content_cls_logits, audio_cls_logits, style_code_shuffle,
              style_code_cycle, content_code_cycle, logit_scale)

    @jax.jit
    def run(output, label, id_label):
        return compose_cycle_loss(cfg, output, label, id_label=id_label)

    result = run(output, label, id_label)
    jax.block_until_ready(result['loss'])
    print("KERNEL_OK")
</pallas_src>

<mosaic_0001>
module attributes {stable_mosaic.version = 11 : i64} {
  func.func @_recon_pair_kernel(%arg0: i32, %arg1: i32, %arg2: memref<12x128xf32, #tpu.memory_space<vmem>>, %arg3: memref<12x128xf32, #tpu.memory_space<vmem>>, %arg4: memref<12x128xf32, #tpu.memory_space<vmem>>, %arg5: memref<1x2x128xf32, #tpu.memory_space<vmem>>) attributes {dimension_semantics = [#tpu.dimension_semantics<parallel>, #tpu.dimension_semantics<arbitrary>], iteration_bounds = array<i64: 1, 1>, scalar_prefetch = 0 : i64, scratch_operands = 0 : i64, tpu.core_type = #tpu.core_type<tc>, window_params = [{transform_indices = @transform_0, window_bounds = array<i64: 12, 128>}, {transform_indices = @transform_1, window_bounds = array<i64: 12, 128>}, {transform_indices = @transform_2, window_bounds = array<i64: 12, 128>}, {transform_indices = @transform_3, window_bounds = array<i64: 1, 2, 128>}]} {
    %c0_i32 = arith.constant 0 : i32
    %0 = arith.cmpi eq, %arg1, %c0_i32 : i32
    %1 = arith.extui %0 : i1 to i32
    %c0_i32_0 = arith.constant 0 : i32
    %2 = arith.cmpi ne, %1, %c0_i32_0 : i32
    scf.if %2 {
      %cst_18 = arith.constant 0.000000e+00 : f32
      %26 = vector.broadcast %cst_18 : f32 to vector<1x2x128xf32>
      %c0_19 = arith.constant 0 : index
      %c0_20 = arith.constant 0 : index
      %c0_21 = arith.constant 0 : index
      %27 = vector.load %arg5[%c0_19, %c0_20, %c0_21] : memref<1x2x128xf32, #tpu.memory_space<vmem>>, vector<1x2x128xf32>
      tpu.vector_store %arg5[%c0_19, %c0_20, %c0_21], %26 {strides = array<i32>} : memref<1x2x128xf32, #tpu.memory_space<vmem>>, vector<1x2x128xf32>,
    } else {
    }
    %c0 = arith.constant 0 : index
    %c0_1 = arith.constant 0 : index
    %3 = vector.load %arg4[%c0, %c0_1] : memref<12x128xf32, #tpu.memory_space<vmem>>, vector<12x128xf32>
    %c0_2 = arith.constant 0 : index
    %c0_3 = arith.constant 0 : index
    %4 = vector.load %arg2[%c0_2, %c0_3] : memref<12x128xf32, #tpu.memory_space<vmem>>, vector<12x128xf32>
    %5 = arith.subf %4, %3 : vector<12x128xf32>
    %c0_4 = arith.constant 0 : index
    %c0_5 = arith.constant 0 : index
    %6 = vector.load %arg3[%c0_4, %c0_5] : memref<12x128xf32, #tpu.memory_space<vmem>>, vector<12x128xf32>
    %7 = arith.subf %6, %3 : vector<12x128xf32>
    %8 = arith.mulf %5, %5 : vector<12x128xf32>
    %9 = arith.mulf %7, %7 : vector<12x128xf32>
    %cst = arith.constant dense<0.000000e+00> : vector<128xf32>
    %10 = vector.multi_reduction <add>, %8, %cst [0] : vector<12x128xf32> to vector<128xf32>
    %11 = vector.shape_cast %10 : vector<128xf32> to vector<1x128xf32>
    %cst_6 = arith.constant dense<0.000000e+00> : vector<128xf32>
    %12 = vector.multi_reduction <add>, %9, %cst_6 [0] : vector<12x128xf32> to vector<128xf32>
    %13 = vector.shape_cast %12 : vector<128xf32> to vector<1x128xf32>
    %c0_7 = arith.constant 0 : index
    %c0_8 = arith.constant 0 : index
    %c0_9 = arith.constant 0 : index
    %14 = vector.load %arg5[%c0_7, %c0_8, %c0_9] : memref<1x2x128xf32, #tpu.memory_space<vmem>>, vector<1x1x128xf32>
    %15 = vector.shape_cast %14 : vector<1x1x128xf32> to vector<1x128xf32>
    %16 = arith.addf %15, %11 : vector<1x128xf32>
    %c0_10 = arith.constant 0 : index
    %c0_11 = arith.constant 0 : index
    %c0_12 = arith.constant 0 : index
    %17 = vector.load %arg5[%c0_10, %c0_11, %c0_12] : memref<1x2x128xf32, #tpu.memory_space<vmem>>, vector<1x1x128xf32>
    %18 = vector.shape_cast %17 : vector<1x1x128xf32> to vector<1x128xf32>
    %19 = vector.shape_cast %16 : vector<1x128xf32> to vector<1x1x128xf32>
    tpu.vector_store %arg5[%c0_10, %c0_11, %c0_12], %19 {strides = array<i32>} : memref<1x2x128xf32, #tpu.memory_space<vmem>>, vector<1x1x128xf32>,
    %c0_13 = arith.constant 0 : index
    %c1 = arith.constant 1 : index
    %c0_14 = arith.constant 0 : index
    %20 = vector.load %arg5[%c0_13, %c1, %c0_14] : memref<1x2x128xf32, #tpu.memory_space<vmem>>, vector<1x1x128xf32>
    %21 = vector.shape_cast %20 : vector<1x1x128xf32> to vector<1x128xf32>
    %22 = arith.addf %21, %13 : vector<1x128xf32>
    %c0_15 = arith.constant 0 : index
    %c1_16 = arith.constant 1 : index
    %c0_17 = arith.constant 0 : index
    %23 = vector.load %arg5[%c0_15, %c1_16, %c0_17] : memref<1x2x128xf32, #tpu.memory_space<vmem>>, vector<1x1x128xf32>
    %24 = vector.shape_cast %23 : vector<1x1x128xf32> to vector<1x128xf32>
    %25 = vector.shape_cast %22 : vector<1x128xf32> to vector<1x1x128xf32>
    tpu.vector_store %arg5[%c0_15, %c1_16, %c0_17], %25 {strides = array<i32>} : memref<1x2x128xf32, #tpu.memory_space<vmem>>, vector<1x1x128xf32>,
    return
  }
  func.func @transform_0(%arg0: i32, %arg1: i32) -> (i32, i32) {
    %c1_i32 = arith.constant 1 : i32
    %0 = arith.muli %arg0, %c1_i32 : i32
    %1 = arith.addi %0, %arg1 : i32
    %c0_i32 = arith.constant 0 : i32
    %2 = arith.minsi %1, %c0_i32 : i32
    %c0_i32_0 = arith.constant 0 : i32
    %c0_i32_1 = arith.constant 0 : i32
    return %2, %c0_i32_0 : i32, i32
  }
  func.func @transform_1(%arg0: i32, %arg1: i32) -> (i32, i32) {
    %c1_i32 = arith.constant 1 : i32
    %0 = arith.muli %arg0, %c1_i32 : i32
    %1 = arith.addi %0, %arg1 : i32
    %c0_i32 = arith.constant 0 : i32
    %2 = arith.minsi %1, %c0_i32 : i32
    %c0_i32_0 = arith.constant 0 : i32
    %c0_i32_1 = arith.constant 0 : i32
    return %2, %c0_i32_0 : i32, i32
  }
  func.func @transform_2(%arg0: i32, %arg1: i32) -> (i32, i32) {
    %c1_i32 = arith.constant 1 : i32
    %0 = arith.muli %arg0, %c1_i32 : i32
    %1 = arith.addi %0, %arg1 : i32
    %c0_i32 = arith.constant 0 : i32
    %2 = arith.minsi %1, %c0_i32 : i32
    %c0_i32_0 = arith.constant 0 : i32
    %c0_i32_1 = arith.constant 0 : i32
    return %2, %c0_i32_0 : i32, i32
  }
  func.func @transform_3(%arg0: i32, %arg1: i32) -> (i32, i32, i32) {
    %c0_i32 = arith.constant 0 : i32
    %c0_i32_0 = arith.constant 0 : i32
    %c0_i32_1 = arith.constant 0 : i32
    return %arg0, %c0_i32, %c0_i32_0 : i32, i32, i32
  }
}

module attributes {stable_mosaic.version = 11 : i64} {
  func.func @_fused_small_losses_kernel(%arg0: memref<2x256xf32, #tpu.memory_space<vmem>>, %arg1: memref<2x256xf32, #tpu.memory_space<vmem>>, %arg2: memref<2x256xf32, #tpu.memory_space<vmem>>, %arg3: memref<16x32xf32, #tpu.memory_space<vmem>>, %arg4: memref<16x32xf32, #tpu.memory_space<vmem>>, %arg5: memref<1x1xf32, #tpu.memory_space<smem>>, %arg6: memref<2x1xi32, #tpu.memory_space<vmem>>, %arg7: memref<2x10xf32, #tpu.memory_space<vmem>>, %arg8: memref<2x10xf32, #tpu.memory_space<vmem>>, %arg9: memref<2x10xf32, #tpu.memory_space<vmem>>, %arg10: memref<2x64xf32, #tpu.memory_space<vmem>>, %arg11: memref<2x64xf32, #tpu.memory_space<vmem>>, %arg12: memref<1x128xf32, #tpu.memory_space<vmem>>) attributes {dimension_semantics = [], scalar_prefetch = 0 : i64, scratch_operands = 0 : i64, tpu.core_type = #tpu.core_type<tc>} {
    %0 = tpu.iota {dimensions = array<i32: 1>} : vector<1x128xi32>
    %cst = arith.constant 0.000000e+00 : f32
    %1 = vector.broadcast %cst : f32 to vector<1x128xf32>
    %c0 = arith.constant 0 : index
    %c0_0 = arith.constant 0 : index
    %2 = vector.load %arg0[%c0, %c0_0] : memref<2x256xf32, #tpu.memory_space<vmem>>, vector<2x256xf32>
    %c0_1 = arith.constant 0 : index
    %c0_2 = arith.constant 0 : index
    %3 = vector.load %arg1[%c0_1, %c0_2] : memref<2x256xf32, #tpu.memory_space<vmem>>, vector<2x256xf32>
    %4 = arith.subf %2, %3 : vector<2x256xf32>
    %5 = arith.mulf %4, %4 : vector<2x256xf32>
    %6 = vector.shape_cast %5 : vector<2x256xf32> to vector<1x2x256xf32>
    %cst_3 = arith.constant dense<0.000000e+00> : vector<1xf32>
    %7 = vector.multi_reduction <add>, %6, %cst_3 [1, 2] : vector<1x2x256xf32> to vector<1xf32>
    %8 = vector.shape_cast %7 : vector<1xf32> to vector<1x1x1xf32>
    %9 = vector.extract %8[0, 0, 0] : f32 from vector<1x1x1xf32>
    %cst_4 = arith.constant 5.120000e+02 : f32
    %10 = arith.divf %9, %cst_4 : f32
    %cst_5 = arith.constant 5.000000e-01 : f32
    %11 = arith.mulf %cst_5, %10 : f32
    %c0_i32 = arith.constant 0 : i32
    %12 = vector.broadcast %c0_i32 : i32 to vector<1x128xi32>
    %13 = arith.cmpi eq, %0, %12 : vector<1x128xi32>
    %14 = vector.broadcast %11 : f32 to vector<1x128xf32>
    %15 = arith.select %13, %14, %1 : vector<1x128xi1>, vector<1x128xf32>
    %16 = arith.mulf %2, %2 : vector<2x256xf32>
    %cst_6 = arith.constant dense<0.000000e+00> : vector<2xf32>
    %17 = vector.multi_reduction <add>, %16, %cst_6 [1] : vector<2x256xf32> to vector<2xf32>
    %18 = vector.shape_cast %17 : vector<2xf32> to vector<2x1xf32>
    %cst_7 = arith.constant 1.000000e-24 : f32
    %19 = vector.broadcast %cst_7 : f32 to vector<2x1xf32>
    %20 = arith.maximumf %18, %19 : vector<2x1xf32>
    %21 = math.rsqrt %20 : vector<2x1xf32>
    %22 = vector.broadcast %21 : vector<2x1xf32> to vector<2x256xf32>
    %23 = arith.mulf %2, %22 : vector<2x256xf32>
    %24 = arith.truncf %23 : vector<2x256xf32> to vector<2x256xbf16>
    %25 = arith.mulf %3, %3 : vector<2x256xf32>
    %cst_8 = arith.constant dense<0.000000e+00> : vector<2xf32>
    %26 = vector.multi_reduction <add>, %25, %cst_8 [1] : vector<2x256xf32> to vector<2xf32>
    %27 = vector.shape_cast %26 : vector<2xf32> to vector<2x1xf32>
    %cst_9 = arith.constant 1.000000e-24 : f32
    %28 = vector.broadcast %cst_9 : f32 to vector<2x1xf32>
    %29 = arith.maximumf %27, %28 : vector<2x1xf32>
    %30 = math.rsqrt %29 : vector<2x1xf32>
    %31 = vector.broadcast %30 : vector<2x1xf32> to vector<2x256xf32>
    %32 = arith.mulf %3, %31 : vector<2x256xf32>
    %33 = arith.truncf %32 : vector<2x256xf32> to vector<2x256xbf16>
    %cst_10 = arith.constant dense<0.000000e+00> : vector<2x2xf32>
    %34 = tpu.matmul %24, %33, %cst_10 {dimension_numbers = #tpu.dot_dimension_numbers<[1], [1], [0], [0], [0, 0, 1, 0], [], []>} : vector<2x256xbf16>, vector<2x256xbf16>, vector<2x2xf32> -> vector<2x2xf32>
    %cst_11 = arith.constant 2.000000e+00 : f32
    %35 = vector.broadcast %cst_11 : f32 to vector<2x2xf32>
    %36 = arith.mulf %35, %34 : vector<2x2xf32>
    %cst_12 = arith.constant 2.000000e+00 : f32
    %37 = vector.broadcast %cst_12 : f32 to vector<2x2xf32>
    %38 = arith.subf %37, %36 : vector<2x2xf32>
    %cst_13 = arith.constant 0.000000e+00 : f32
    %39 = vector.broadcast %cst_13 : f32 to vector<2x2xf32>
    %40 = arith.maximumf %38, %39 : vector<2x2xf32>
    %41 = tpu.iota {dimensions = array<i32: 0>} : vector<2x2xi32>
    %42 = tpu.iota {dimensions = array<i32: 1>} : vector<2x2xi32>
    %43 = arith.cmpi eq, %41, %42 : vector<2x2xi32>
    %44 = math.sqrt %40 : vector<2x2xf32>
    %cst_14 = arith.constant 5.000000e-01 : f32
    %45 = vector.broadcast %cst_14 : f32 to vector<2x2xf32>
    %46 = arith.subf %45, %44 : vector<2x2xf32>
    %cst_15 = arith.constant 0.000000e+00 : f32
    %47 = vector.broadcast %cst_15 : f32 to vector<2x2xf32>
    %48 = arith.maximumf %46, %47 : vector<2x2xf32>
    %cst_16 = arith.constant 0.000000e+00 : f32
    %49 = vector.broadcast %cst_16 : f32 to vector<2x2xf32>
    %50 = arith.select %43, %49, %48 : vector<2x2xi1>, vector<2x2xf32>
    %cst_17 = arith.constant 0.000000e+00 : f32
    %51 = vector.broadcast %cst_17 : f32 to vector<2x2xf32>
    %52 = arith.select %43, %40, %51 : vector<2x2xi1>, vector<2x2xf32>
    %53 = arith.mulf %50, %50 : vector<2x2xf32>
    %54 = vector.shape_cast %53 : vector<2x2xf32> to vector<1x2x2xf32>
    %cst_18 = arith.constant dense<0.000000e+00> : vector<1xf32>
    %55 = vector.multi_reduction <add>, %54, %cst_18 [1, 2] : vector<1x2x2xf32> to vector<1xf32>
    %56 = vector.shape_cast %55 : vector<1xf32> to vector<1x1x1xf32>
    %57 = vector.extract %56[0, 0, 0] : f32 from vector<1x1x1xf32>
    %58 = vector.shape_cast %52 : vector<2x2xf32> to vector<1x2x2xf32>
    %cst_19 = arith.constant dense<0.000000e+00> : vector<1xf32>
    %59 = vector.multi_reduction <add>, %58, %cst_19 [1, 2] : vector<1x2x2xf32> to vector<1xf32>
    %60 = vector.shape_cast %59 : vector<1xf32> to vector<1x1x1xf32>
    %61 = vector.extract %60[0, 0, 0] : f32 from vector<1x1x1xf32>
    %62 = arith.addf %57, %61 : f32
    %cst_20 = arith.constant 4.000000e+00 : f32
    %63 = arith.divf %62, %cst_20 : f32
    %cst_21 = arith.constant 5.000000e-01 : f32
    %64 = arith.mulf %cst_21, %63 : f32
    %c1_i32 = arith.constant 1 : i32
    %65 = vector.broadcast %c1_i32 : i32 to vector<1x128xi32>
    %66 = arith.cmpi eq, %0, %65 : vector<1x128xi32>
    %67 = vector.broadcast %64 : f32 to vector<1x128xf32>
    %68 = arith.select %66, %67, %15 : vector<1x128xi1>, vector<1x128xf32>
    %c0_22 = arith.constant 0 : index
    %c0_23 = arith.constant 0 : index
    %69 = vector.load %arg3[%c0_22, %c0_23] : memref<16x32xf32, #tpu.memory_space<vmem>>, vector<16x32xf32>
    %c0_24 = arith.constant 0 : index
    %c0_25 = arith.constant 0 : index
    %70 = vector.load %arg4[%c0_24, %c0_25] : memref<16x32xf32, #tpu.memory_space<vmem>>, vector<16x32xf32>
    %c0_26 = arith.constant 0 : index
    %c0_27 = arith.constant 0 : index
    %71 = memref.load %arg5[%c0_26, %c0_27] : memref<1x1xf32, #tpu.memory_space<smem>>
    %72 = arith.mulf %69, %69 : vector<16x32xf32>
    %cst_28 = arith.constant dense<0.000000e+00> : vector<16xf32>
    %73 = vector.multi_reduction <add>, %72, %cst_28 [1] : vector<16x32xf32> to vector<16xf32>
    %74 = vector.shape_cast %73 : vector<16xf32> to vector<16x1xf32>
    %cst_29 = arith.constant 1.000000e-24 : f32
    %75 = vector.broadcast %cst_29 : f32 to vector<16x1xf32>
    %76 = arith.maximumf %74, %75 : vector<16x1xf32>
    %77 = math.rsqrt %76 : vector<16x1xf32>
    %78 = vector.broadcast %77 : vector<16x1xf32> to vector<16x32xf32>
    %79 = arith.mulf %69, %78 : vector<16x32xf32>
    %80 = arith.truncf %79 : vector<16x32xf32> to vector<16x32xbf16>
    %81 = arith.mulf %70, %70 : vector<16x32xf32>
    %cst_30 = arith.constant dense<0.000000e+00> : vector<16xf32>
    %82 = vector.multi_reduction <add>, %81, %cst_30 [1] : vector<16x32xf32> to vector<16xf32>
    %83 = vector.shape_cast %82 : vector<16xf32> to vector<16x1xf32>
    %cst_31 = arith.constant 1.000000e-24 : f32
    %84 = vector.broadcast %cst_31 : f32 to vector<16x1xf32>
    %85 = arith.maximumf %83, %84 : vector<16x1xf32>
    %86 = math.rsqrt %85 : vector<16x1xf32>
    %87 = vector.broadcast %86 : vector<16x1xf32> to vector<16x32xf32>
    %88 = arith.mulf %70, %87 : vector<16x32xf32>
    %89 = arith.truncf %88 : vector<16x32xf32> to vector<16x32xbf16>
    %cst_32 = arith.constant dense<0.000000e+00> : vector<16x16xf32>
    %90 = tpu.matmul %80, %89, %cst_32 {dimension_numbers = #tpu.dot_dimension_numbers<[1], [1], [0], [0], [0, 0, 1, 0], [], []>} : vector<16x32xbf16>, vector<16x32xbf16>, vector<16x16xf32> -> vector<16x16xf32>
    %91 = vector.broadcast %71 : f32 to vector<16x16xf32>
    %92 = arith.mulf %91, %90 : vector<16x16xf32>
    %93 = tpu.iota {dimensions = array<i32: 0>} : vector<16x16xi32>
    %94 = tpu.iota {dimensions = array<i32: 1>} : vector<16x16xi32>
    %95 = arith.cmpi eq, %93, %94 : vector<16x16xi32>
    %cst_33 = arith.constant 0.000000e+00 : f32
    %96 = vector.broadcast %cst_33 : f32 to vector<16x16xf32>
    %97 = arith.select %95, %92, %96 : vector<16x16xi1>, vector<16x16xf32>
    %cst_34 = arith.constant dense<0.000000e+00> : vector<16xf32>
    %98 = vector.multi_reduction <add>, %97, %cst_34 [1] : vector<16x16xf32> to vector<16xf32>
    %99 = vector.shape_cast %98 : vector<16xf32> to vector<16x1xf32>
    %cst_35 = arith.constant dense<0xFF800000> : vector<16xf32>
    %100 = vector.multi_reduction <maximumf>, %92, %cst_35 [1] : vector<16x16xf32> to vector<16xf32>
    %101 = vector.shape_cast %100 : vector<16xf32> to vector<16x1xf32>
    %102 = vector.broadcast %101 : vector<16x1xf32> to vector<16x16xf32>
    %103 = arith.subf %92, %102 : vector<16x16xf32>
    %104 = math.exp %103 : vector<16x16xf32>
    %cst_36 = arith.constant dense<0.000000e+00> : vector<16xf32>
    %105 = vector.multi_reduction <add>, %104, %cst_36 [1] : vector<16x16xf32> to vector<16xf32>
    %106 = vector.shape_cast %105 : vector<16xf32> to vector<16x1xf32>
    %107 = math.log %106 : vector<16x1xf32>
    %108 = arith.addf %107, %101 : vector<16x1xf32>
    %109 = arith.subf %108, %99 : vector<16x1xf32>
    %110 = vector.shape_cast %109 : vector<16x1xf32> to vector<1x16x1xf32>
    %cst_37 = arith.constant dense<0.000000e+00> : vector<1xf32>
    %111 = vector.multi_reduction <add>, %110, %cst_37 [1, 2] : vector<1x16x1xf32> to vector<1xf32>
    %112 = vector.shape_cast %111 : vector<1xf32> to vector<1x1x1xf32>
    %113 = vector.extract %112[0, 0, 0] : f32 from vector<1x1x1xf32>
    %cst_38 = arith.constant 1.600000e+01 : f32
    %114 = arith.divf %113, %cst_38 : f32
    %cst_39 = arith.constant 0.000000e+00 : f32
    %115 = vector.broadcast %cst_39 : f32 to vector<16x16xf32>
    %116 = arith.select %95, %92, %115 : vector<16x16xi1>, vector<16x16xf32>
    %cst_40 = arith.constant dense<0.000000e+00> : vector<16xf32>
    %117 = vector.multi_reduction <add>, %116, %cst_40 [0] : vector<16x16xf32> to vector<16xf32>
    %118 = vector.shape_cast %117 : vector<16xf32> to vector<1x16xf32>
    %cst_41 = arith.constant dense<0xFF800000> : vector<16xf32>
    %119 = vector.multi_reduction <maximumf>, %92, %cst_41 [0] : vector<16x16xf32> to vector<16xf32>
    %120 = vector.shape_cast %119 : vector<16xf32> to vector<1x16xf32>
    %121 = vector.broadcast %120 : vector<1x16xf32> to vector<16x16xf32>
    %122 = arith.subf %92, %121 : vector<16x16xf32>
    %123 = math.exp %122 : vector<16x16xf32>
    %cst_42 = arith.constant dense<0.000000e+00> : vector<16xf32>
    %124 = vector.multi_reduction <add>, %123, %cst_42 [0] : vector<16x16xf32> to vector<16xf32>
    %125 = vector.shape_cast %124 : vector<16xf32> to vector<1x16xf32>
    %126 = math.log %125 : vector<1x16xf32>
    %127 = arith.addf %126, %120 : vector<1x16xf32>
    %128 = arith.subf %127, %118 : vector<1x16xf32>
    %129 = vector.shape_cast %128 : vector<1x16xf32> to vector<1x1x16xf32>
    %cst_43 = arith.constant dense<0.000000e+00> : vector<1xf32>
    %130 = vector.multi_reduction <add>, %129, %cst_43 [1, 2] : vector<1x1x16xf32> to vector<1xf32>
    %131 = vector.shape_cast %130 : vector<1xf32> to vector<1x1x1xf32>
    %132 = vector.extract %131[0, 0, 0] : f32 from vector<1x1x1xf32>
    %cst_44 = arith.constant 1.600000e+01 : f32
    %133 = arith.divf %132, %cst_44 : f32
    %134 = arith.addf %114, %133 : f32
    %cst_45 = arith.constant 5.000000e-01 : f32
    %135 = arith.mulf %cst_45, %134 : f32
    %cst_46 = arith.constant 1.000000e+00 : f32
    %136 = arith.mulf %cst_46, %135 : f32
    %c2_i32 = arith.constant 2 : i32
    %137 = vector.broadcast %c2_i32 : i32 to vector<1x128xi32>
    %138 = arith.cmpi eq, %0, %137 : vector<1x128xi32>
    %139 = vector.broadcast %136 : f32 to vector<1x128xf32>
    %140 = arith.select %138, %139, %68 : vector<1x128xi1>, vector<1x128xf32>
    %c0_47 = arith.constant 0 : index
    %c0_48 = arith.constant 0 : index
    %141 = vector.load %arg7[%c0_47, %c0_48] : memref<2x10xf32, #tpu.memory_space<vmem>>, vector<2x10xf32>
    %c0_49 = arith.constant 0 : index
    %c0_50 = arith.constant 0 : index
    %142 = vector.load %arg6[%c0_49, %c0_50] : memref<2x1xi32, #tpu.memory_space<vmem>>, vector<2x1xi32>
    %143 = tpu.iota {dimensions = array<i32: 1>} : vector<2x10xi32>
    %144 = vector.broadcast %142 : vector<2x1xi32> to vector<2x10xi32>
    %145 = arith.cmpi eq, %143, %144 : vector<2x10xi32>
    %cst_51 = arith.constant dense<0xFF800000> : vector<2xf32>
    %146 = vector.multi_reduction <maximumf>, %141, %cst_51 [1] : vector<2x10xf32> to vector<2xf32>
    %147 = vector.shape_cast %146 : vector<2xf32> to vector<2x1xf32>
    %148 = vector.broadcast %147 : vector<2x1xf32> to vector<2x10xf32>
    %149 = arith.subf %141, %148 : vector<2x10xf32>
    %150 = math.exp %149 : vector<2x10xf32>
    %cst_52 = arith.constant dense<0.000000e+00> : vector<2xf32>
    %151 = vector.multi_reduction <add>, %150, %cst_52 [1] : vector<2x10xf32> to vector<2xf32>
    %152 = vector.shape_cast %151 : vector<2xf32> to vector<2x1xf32>
    %153 = math.log %152 : vector<2x1xf32>
    %154 = arith.addf %153, %147 : vector<2x1xf32>
    %cst_53 = arith.constant 0.000000e+00 : f32
    %155 = vector.broadcast %cst_53 : f32 to vector<2x10xf32>
    %156 = arith.select %145, %141, %155 : vector<2x10xi1>, vector<2x10xf32>
    %cst_54 = arith.constant dense<0.000000e+00> : vector<2xf32>
    %157 = vector.multi_reduction <add>, %156, %cst_54 [1] : vector<2x10xf32> to vector<2xf32>
    %158 = vector.shape_cast %157 : vector<2xf32> to vector<2x1xf32>
    %159 = arith.subf %154, %158 : vector<2x1xf32>
    %160 = vector.shape_cast %159 : vector<2x1xf32> to vector<1x2x1xf32>
    %cst_55 = arith.constant dense<0.000000e+00> : vector<1xf32>
    %161 = vector.multi_reduction <add>, %160, %cst_55 [1, 2] : vector<1x2x1xf32> to vector<1xf32>
    %162 = vector.shape_cast %161 : vector<1xf32> to vector<1x1x1xf32>
    %163 = vector.extract %162[0, 0, 0] : f32 from vector<1x1x1xf32>
    %cst_56 = arith.constant 2.000000e+00 : f32
    %164 = arith.divf %163, %cst_56 : f32
    %165 = vector.broadcast %147 : vector<2x1xf32> to vector<2x10xf32>
    %166 = arith.cmpf oeq, %141, %165 : vector<2x10xf32>
    %c10_i32 = arith.constant 10 : i32
    %167 = vector.broadcast %c10_i32 : i32 to vector<2x10xi32>
    %168 = arith.select %166, %143, %167 : vector<2x10xi1>, vector<2x10xi32>
    %cst_57 = arith.constant dense<2147483647> : vector<2xi32>
    %169 = vector.multi_reduction <minsi>, %168, %cst_57 [1] : vector<2x10xi32> to vector<2xi32>
    %170 = vector.shape_cast %169 : vector<2xi32> to vector<2x1xi32>
    %171 = arith.cmpi eq, %170, %142 : vector<2x1xi32>
    %172 = arith.extui %171 : vector<2x1xi1> to vector<2x1xi32>
    %173 = arith.sitofp %172 : vector<2x1xi32> to vector<2x1xf32>
    %174 = vector.shape_cast %173 : vector<2x1xf32> to vector<1x2x1xf32>
    %cst_58 = arith.constant dense<0.000000e+00> : vector<1xf32>
    %175 = vector.multi_reduction <add>, %174, %cst_58 [1, 2] : vector<1x2x1xf32> to vector<1xf32>
    %176 = vector.shape_cast %175 : vector<1xf32> to vector<1x1x1xf32>
    %177 = vector.extract %176[0, 0, 0] : f32 from vector<1x1x1xf32>
    %cst_59 = arith.constant 2.000000e+00 : f32
    %178 = arith.divf %177, %cst_59 : f32
    %cst_60 = arith.constant 1.000000e+00 : f32
    %179 = arith.mulf %cst_60, %164 : f32
    %c3_i32 = arith.constant 3 : i32
    %180 = vector.broadcast %c3_i32 : i32 to vector<1x128xi32>
    %181 = arith.cmpi eq, %0, %180 : vector<1x128xi32>
    %182 = vector.broadcast %179 : f32 to vector<1x128xf32>
    %183 = arith.select %181, %182, %140 : vector<1x128xi1>, vector<1x128xf32>
    %c4_i32 = arith.constant 4 : i32
    %184 = vector.broadcast %c4_i32 : i32 to vector<1x128xi32>
    %185 = arith.cmpi eq, %0, %184 : vector<1x128xi32>
    %186 = vector.broadcast %178 : f32 to vector<1x128xf32>
    %187 = arith.select %185, %186, %183 : vector<1x128xi1>, vector<1x128xf32>
    %c0_61 = arith.constant 0 : index
    %c0_62 = arith.constant 0 : index
    %188 = vector.load %arg8[%c0_61, %c0_62] : memref<2x10xf32, #tpu.memory_space<vmem>>, vector<2x10xf32>
    %c0_63 = arith.constant 0 : index
    %c0_64 = arith.constant 0 : index
    %189 = vector.load %arg6[%c0_63, %c0_64] : memref<2x1xi32, #tpu.memory_space<vmem>>, vector<2x1xi32>
    %190 = tpu.iota {dimensions = array<i32: 1>} : vector<2x10xi32>
    %191 = vector.broadcast %189 : vector<2x1xi32> to vector<2x10xi32>
    %192 = arith.cmpi eq, %190, %191 : vector<2x10xi32>
    %cst_65 = arith.constant dense<0xFF800000> : vector<2xf32>
    %193 = vector.multi_reduction <maximumf>, %188, %cst_65 [1] : vector<2x10xf32> to vector<2xf32>
    %194 = vector.shape_cast %193 : vector<2xf32> to vector<2x1xf32>
    %195 = vector.broadcast %194 : vector<2x1xf32> to vector<2x10xf32>
    %196 = arith.subf %188, %195 : vector<2x10xf32>
    %197 = math.exp %196 : vector<2x10xf32>
    %cst_66 = arith.constant dense<0.000000e+00> : vector<2xf32>
    %198 = vector.multi_reduction <add>, %197, %cst_66 [1] : vector<2x10xf32> to vector<2xf32>
    %199 = vector.shape_cast %198 : vector<2xf32> to vector<2x1xf32>
    %200 = math.log %199 : vector<2x1xf32>
    %201 = arith.addf %200, %194 : vector<2x1xf32>
    %cst_67 = arith.constant 0.000000e+00 : f32
    %202 = vector.broadcast %cst_67 : f32 to vector<2x10xf32>
    %203 = arith.select %192, %188, %202 : vector<2x10xi1>, vector<2x10xf32>
    %cst_68 = arith.constant dense<0.000000e+00> : vector<2xf32>
    %204 = vector.multi_reduction <add>, %203, %cst_68 [1] : vector<2x10xf32> to vector<2xf32>
    %205 = vector.shape_cast %204 : vector<2xf32> to vector<2x1xf32>
    %206 = arith.subf %201, %205 : vector<2x1xf32>
    %207 = vector.shape_cast %206 : vector<2x1xf32> to vector<1x2x1xf32>
    %cst_69 = arith.constant dense<0.000000e+00> : vector<1xf32>
    %208 = vector.multi_reduction <add>, %207, %cst_69 [1, 2] : vector<1x2x1xf32> to vector<1xf32>
    %209 = vector.shape_cast %208 : vector<1xf32> to vector<1x1x1xf32>
    %210 = vector.extract %209[0, 0, 0] : f32 from vector<1x1x1xf32>
    %cst_70 = arith.constant 2.000000e+00 : f32
    %211 = arith.divf %210, %cst_70 : f32
    %212 = vector.broadcast %194 : vector<2x1xf32> to vector<2x10xf32>
    %213 = arith.cmpf oeq, %188, %212 : vector<2x10xf32>
    %c10_i32_71 = arith.constant 10 : i32
    %214 = vector.broadcast %c10_i32_71 : i32 to vector<2x10xi32>
    %215 = arith.select %213, %190, %214 : vector<2x10xi1>, vector<2x10xi32>
    %cst_72 = arith.constant dense<2147483647> : vector<2xi32>
    %216 = vector.multi_reduction <minsi>, %215, %cst_72 [1] : vector<2x10xi32> to vector<2xi32>
    %217 = vector.shape_cast %216 : vector<2xi32> to vector<2x1xi32>
    %218 = arith.cmpi eq, %217, %189 : vector<2x1xi32>
    %219 = arith.extui %218 : vector<2x1xi1> to vector<2x1xi32>
    %220 = arith.sitofp %219 : vector<2x1xi32> to vector<2x1xf32>
    %221 = vector.shape_cast %220 : vector<2x1xf32> to vector<1x2x1xf32>
    %cst_73 = arith.constant dense<0.000000e+00> : vector<1xf32>
    %222 = vector.multi_reduction <add>, %221, %cst_73 [1, 2] : vector<1x2x1xf32> to vector<1xf32>
    %223 = vector.shape_cast %222 : vector<1xf32> to vector<1x1x1xf32>
    %224 = vector.extract %223[0, 0, 0] : f32 from vector<1x1x1xf32>
    %cst_74 = arith.constant 2.000000e+00 : f32
    %225 = arith.divf %224, %cst_74 : f32
    %cst_75 = arith.constant 1.000000e+00 : f32
    %226 = arith.mulf %cst_75, %211 : f32
    %c5_i32 = arith.constant 5 : i32
    %227 = vector.broadcast %c5_i32 : i32 to vector<1x128xi32>
    %228 = arith.cmpi eq, %0, %227 : vector<1x128xi32>
    %229 = vector.broadcast %226 : f32 to vector<1x128xf32>
    %230 = arith.select %228, %229, %187 : vector<1x128xi1>, vector<1x128xf32>
    %c6_i32 = arith.constant 6 : i32
    %231 = vector.broadcast %c6_i32 : i32 to vector<1x128xi32>
    %232 = arith.cmpi eq, %0, %231 : vector<1x128xi32>
    %233 = vector.broadcast %225 : f32 to vector<1x128xf32>
    %234 = arith.select %232, %233, %230 : vector<1x128xi1>, vector<1x128xf32>
    %c0_76 = arith.constant 0 : index
    %c0_77 = arith.constant 0 : index
    %235 = vector.load %arg9[%c0_76, %c0_77] : memref<2x10xf32, #tpu.memory_space<vmem>>, vector<2x10xf32>
    %cst_78 = arith.constant dense<0xFF800000> : vector<2xf32>
    %236 = vector.multi_reduction <maximumf>, %235, %cst_78 [1] : vector<2x10xf32> to vector<2xf32>
    %237 = vector.shape_cast %236 : vector<2xf32> to vector<2x1xf32>
    %238 = vector.broadcast %237 : vector<2x1xf32> to vector<2x10xf32>
    %239 = arith.subf %235, %238 : vector<2x10xf32>
    %240 = math.exp %239 : vector<2x10xf32>
    %cst_79 = arith.constant dense<0.000000e+00> : vector<2xf32>
    %241 = vector.multi_reduction <add>, %240, %cst_79 [1] : vector<2x10xf32> to vector<2xf32>
    %242 = vector.shape_cast %241 : vector<2xf32> to vector<2x1xf32>
    %243 = vector.broadcast %242 : vector<2x1xf32> to vector<2x10xf32>
    %244 = arith.divf %240, %243 : vector<2x10xf32>
    %cst_80 = arith.constant 1.000000e-01 : f32
    %245 = vector.broadcast %cst_80 : f32 to vector<2x10xf32>
    %246 = arith.subf %244, %245 : vector<2x10xf32>
    %247 = arith.mulf %246, %246 : vector<2x10xf32>
    %248 = vector.shape_cast %247 : vector<2x10xf32> to vector<1x2x10xf32>
    %cst_81 = arith.constant dense<0.000000e+00> : vector<1xf32>
    %249 = vector.multi_reduction <add>, %248, %cst_81 [1, 2] : vector<1x2x10xf32> to vector<1xf32>
    %250 = vector.shape_cast %249 : vector<1xf32> to vector<1x1x1xf32>
    %251 = vector.extract %250[0, 0, 0] : f32 from vector<1x1x1xf32>
    %cst_82 = arith.constant 2.000000e+01 : f32
    %252 = arith.divf %251, %cst_82 : f32
    %cst_83 = arith.constant 1.000000e+00 : f32
    %253 = arith.mulf %cst_83, %252 : f32
    %c7_i32 = arith.constant 7 : i32
    %254 = vector.broadcast %c7_i32 : i32 to vector<1x128xi32>
    %255 = arith.cmpi eq, %0, %254 : vector<1x128xi32>
    %256 = vector.broadcast %253 : f32 to vector<1x128xf32>
    %257 = arith.select %255, %256, %234 : vector<1x128xi1>, vector<1x128xf32>
    %c0_84 = arith.constant 0 : index
    %c0_85 = arith.constant 0 : index
    %258 = vector.load %arg10[%c0_84, %c0_85] : memref<2x64xf32, #tpu.memory_space<vmem>>, vector<2x64xf32>
    %c0_86 = arith.constant 0 : index
    %c0_87 = arith.constant 0 : index
    %259 = vector.load %arg11[%c0_86, %c0_87] : memref<2x64xf32, #tpu.memory_space<vmem>>, vector<2x64xf32>
    %260 = arith.mulf %258, %259 : vector<2x64xf32>
    %cst_88 = arith.constant dense<0.000000e+00> : vector<2xf32>
    %261 = vector.multi_reduction <add>, %260, %cst_88 [1] : vector<2x64xf32> to vector<2xf32>
    %262 = vector.shape_cast %261 : vector<2xf32> to vector<2x1xf32>
    %263 = arith.mulf %258, %258 : vector<2x64xf32>
    %cst_89 = arith.constant dense<0.000000e+00> : vector<2xf32>
    %264 = vector.multi_reduction <add>, %263, %cst_89 [1] : vector<2x64xf32> to vector<2xf32>
    %265 = vector.shape_cast %264 : vector<2xf32> to vector<2x1xf32>
    %266 = arith.mulf %259, %259 : vector<2x64xf32>
    %cst_90 = arith.constant dense<0.000000e+00> : vector<2xf32>
    %267 = vector.multi_reduction <add>, %266, %cst_90 [1] : vector<2x64xf32> to vector<2xf32>
    %268 = vector.shape_cast %267 : vector<2xf32> to vector<2x1xf32>
    %269 = arith.mulf %265, %268 : vector<2x1xf32>
    %cst_91 = arith.constant 1.000000e-16 : f32
    %270 = vector.broadcast %cst_91 : f32 to vector<2x1xf32>
    %271 = arith.maximumf %269, %270 : vector<2x1xf32>
    %272 = math.rsqrt %271 : vector<2x1xf32>
    %273 = arith.mulf %262, %272 : vector<2x1xf32>
    %cst_92 = arith.constant 1.000000e+00 : f32
    %274 = vector.broadcast %cst_92 : f32 to vector<2x1xf32>
    %275 = arith.subf %274, %273 : vector<2x1xf32>
    %276 = vector.shape_cast %275 : vector<2x1xf32> to vector<1x2x1xf32>
    %cst_93 = arith.constant dense<0.000000e+00> : vector<1xf32>
    %277 = vector.multi_reduction <add>, %276, %cst_93 [1, 2] : vector<1x2x1xf32> to vector<1xf32>
    %278 = vector.shape_cast %277 : vector<1xf32> to vector<1x1x1xf32>
    %279 = vector.extract %278[0, 0, 0] : f32 from vector<1x1x1xf32>
    %cst_94 = arith.constant 2.000000e+00 : f32
    %280 = arith.divf %279, %cst_94 : f32
    %cst_95 = arith.constant 1.000000e+00 : f32
    %281 = arith.mulf %cst_95, %280 : f32
    %c8_i32 = arith.constant 8 : i32
    %282 = vector.broadcast %c8_i32 : i32 to vector<1x128xi32>
    %283 = arith.cmpi eq, %0, %282 : vector<1x128xi32>
    %284 = vector.broadcast %281 : f32 to vector<1x128xf32>
    %285 = arith.select %283, %284, %257 : vector<1x128xi1>, vector<1x128xf32>
    %c0_96 = arith.constant 0 : index
    %c0_97 = arith.constant 0 : index
    %286 = vector.load %arg2[%c0_96, %c0_97] : memref<2x256xf32, #tpu.memory_space<vmem>>, vector<2x256xf32>
    %287 = arith.mulf %286, %286 : vector<2x256xf32>
    %cst_98 = arith.constant dense<0.000000e+00> : vector<2xf32>
    %288 = vector.multi_reduction <add>, %287, %cst_98 [1] : vector<2x256xf32> to vector<2xf32>
    %289 = vector.shape_cast %288 : vector<2xf32> to vector<2x1xf32>
    %cst_99 = arith.constant 1.000000e-24 : f32
    %290 = vector.broadcast %cst_99 : f32 to vector<2x1xf32>
    %291 = arith.maximumf %289, %290 : vector<2x1xf32>
    %292 = math.rsqrt %291 : vector<2x1xf32>
    %293 = vector.broadcast %292 : vector<2x1xf32> to vector<2x256xf32>
    %294 = arith.mulf %286, %293 : vector<2x256xf32>
    %295 = arith.truncf %294 : vector<2x256xf32> to vector<2x256xbf16>
    %296 = arith.mulf %2, %2 : vector<2x256xf32>
    %cst_100 = arith.constant dense<0.000000e+00> : vector<2xf32>
    %297 = vector.multi_reduction <add>, %296, %cst_100 [1] : vector<2x256xf32> to vector<2xf32>
    %298 = vector.shape_cast %297 : vector<2xf32> to vector<2x1xf32>
    %cst_101 = arith.constant 1.000000e-24 : f32
    %299 = vector.broadcast %cst_101 : f32 to vector<2x1xf32>
    %300 = arith.maximumf %298, %299 : vector<2x1xf32>
    %301 = math.rsqrt %300 : vector<2x1xf32>
    %302 = vector.broadcast %301 : vector<2x1xf32> to vector<2x256xf32>
    %303 = arith.mulf %2, %302 : vector<2x256xf32>
    %304 = arith.truncf %303 : vector<2x256xf32> to vector<2x256xbf16>
    %cst_102 = arith.constant dense<0.000000e+00> : vector<2x2xf32>
    %305 = tpu.matmul %295, %304, %cst_102 {dimension_numbers = #tpu.dot_dimension_numbers<[1], [1], [0], [0], [0, 0, 1, 0], [], []>} : vector<2x256xbf16>, vector<2x256xbf16>, vector<2x2xf32> -> vector<2x2xf32>
    %cst_103 = arith.constant 2.000000e+00 : f32
    %306 = vector.broadcast %cst_103 : f32 to vector<2x2xf32>
    %307 = arith.mulf %306, %305 : vector<2x2xf32>
    %cst_104 = arith.constant 2.000000e+00 : f32
    %308 = vector.broadcast %cst_104 : f32 to vector<2x2xf32>
    %309 = arith.subf %308, %307 : vector<2x2xf32>
    %cst_105 = arith.constant 0.000000e+00 : f32
    %310 = vector.broadcast %cst_105 : f32 to vector<2x2xf32>
    %311 = arith.maximumf %309, %310 : vector<2x2xf32>
    %312 = tpu.iota {dimensions = array<i32: 0>} : vector<2x2xi32>
    %313 = tpu.iota {dimensions = array<i32: 1>} : vector<2x2xi32>
    %314 = arith.cmpi eq, %312, %313 : vector<2x2xi32>
    %315 = math.sqrt %311 : vector<2x2xf32>
    %cst_106 = arith.constant 5.000000e-01 : f32
    %316 = vector.broadcast %cst_106 : f32 to vector<2x2xf32>
    %317 = arith.subf %316, %315 : vector<2x2xf32>
    %cst_107 = arith.constant 0.000000e+00 : f32
    %318 = vector.broadcast %cst_107 : f32 to vector<2x2xf32>
    %319 = arith.maximumf %317, %318 : vector<2x2xf32>
    %cst_108 = arith.constant 0.000000e+00 : f32
    %320 = vector.broadcast %cst_108 : f32 to vector<2x2xf32>
    %321 = arith.select %314, %320, %319 : vector<2x2xi1>, vector<2x2xf32>
    %cst_109 = arith.constant 0.000000e+00 : f32
    %322 = vector.broadcast %cst_109 : f32 to vector<2x2xf32>
    %323 = arith.select %314, %311, %322 : vector<2x2xi1>, vector<2x2xf32>
    %324 = arith.mulf %321, %321 : vector<2x2xf32>
    %325 = vector.shape_cast %324 : vector<2x2xf32> to vector<1x2x2xf32>
    %cst_110 = arith.constant dense<0.000000e+00> : vector<1xf32>
    %326 = vector.multi_reduction <add>, %325, %cst_110 [1, 2] : vector<1x2x2xf32> to vector<1xf32>
    %327 = vector.shape_cast %326 : vector<1xf32> to vector<1x1x1xf32>
    %328 = vector.extract %327[0, 0, 0] : f32 from vector<1x1x1xf32>
    %329 = vector.shape_cast %323 : vector<2x2xf32> to vector<1x2x2xf32>
    %cst_111 = arith.constant dense<0.000000e+00> : vector<1xf32>
    %330 = vector.multi_reduction <add>, %329, %cst_111 [1, 2] : vector<1x2x2xf32> to vector<1xf32>
    %331 = vector.shape_cast %330 : vector<1xf32> to vector<1x1x1xf32>
    %332 = vector.extract %331[0, 0, 0] : f32 from vector<1x1x1xf32>
    %333 = arith.addf %328, %332 : f32
    %cst_112 = arith.constant 4.000000e+00 : f32
    %334 = arith.divf %333, %cst_112 : f32
    %cst_113 = arith.constant 5.000000e-01 : f32
    %335 = arith.mulf %cst_113, %334 : f32
    %c9_i32 = arith.constant 9 : i32
    %336 = vector.broadcast %c9_i32 : i32 to vector<1x128xi32>
    %337 = arith.cmpi eq, %0, %336 : vector<1x128xi32>
    %338 = vector.broadcast %335 : f32 to vector<1x128xf32>
    %339 = arith.select %337, %338, %285 : vector<1x128xi1>, vector<1x128xf32>
    %c0_114 = arith.constant 0 : index
    %c0_115 = arith.constant 0 : index
    %340 = vector.load %arg12[%c0_114, %c0_115] : memref<1x128xf32, #tpu.memory_space<vmem>>, vector<1x128xf32>
    tpu.vector_store %arg12[%c0_114, %c0_115], %339 {strides = array<i32>} : memref<1x128xf32, #tpu.memory_space<vmem>>, vector<1x128xf32>,
    return
  }
}

</mosaic_0001>

<bundles_post_ra>
// kernel: run.2
= control target key start
LH: loop header
LB: loop body
LE: loop exit
PB: predicated region body
PF: predicated region fallthrough
CT: control target
= control target key end

     0   :  { %v175_v0 = vmov 0.0   ;;  %vm129_vm0 = vcmask 1043456   ;;  %s229_s3 = inlined_call_operand.vmem [shape: f32[1,2,128], index: 3, kind: output, shape index: {}]   ;;  %s230_s0 = inlined_call_operand.vmem [shape: f32[12,128], index: 0, kind: input, shape index: {}]   ;;  %s231_s2 = inlined_call_operand.vmem [shape: f32[12,128], index: 2, kind: input, shape index: {}]   ;;  %s232_s1 = inlined_call_operand.vmem [shape: f32[12,128], index: 1, kind: input, shape index: {}]  }
   0x1   :  { %114 = vst [vmem:[%s229_s3] sm:$0x3] %v175_v0  ;;  %v115_v1 = vld [vmem:[%s231_s2] sm:$0xff]  ;;  %v116_v2 = vld [vmem:[%s231_s2 + $0x8] sm:$0xf] }
   0x2   :  { %v117_v3 = vld [vmem:[%s230_s0] sm:$0xff]  ;;  %v118_v4 = vld [vmem:[%s230_s0 + $0x8] sm:$0xf] }
   0x3   :  { %v119_v5 = vsub.f32 %v117_v3, %v115_v1  ;;  %v121_v6 = vld [vmem:[%s232_s1] sm:$0xff]  ;;  %v122_v7 = vld [vmem:[%s232_s1 + $0x8] sm:$0xf]  ;;  %v120_v8 = vsub.f32 %v118_v4, %v116_v2 }
   0x4   :  { %v123_v9 = vsub.f32 %v121_v6, %v115_v1  ;;  %v124_v10 = vsub.f32 %v122_v7, %v116_v2 }
   0x5   :  { %v125_v11 = vmul.f32 %v119_v5, %v119_v5  ;;  %v126_v12 = vmul.f32 %v120_v8, %v120_v8 }
   0x6   :  { %v127_v13 = vmul.f32 %v123_v9, %v123_v9  ;;  %v128_v14 = vmul.f32 %v124_v10, %v124_v10 }
   0x7   :  { %v130_v15 = vsel %vm129_vm0, %v126_v12, 0.0 }
   0x8   :  { %v138_v16 = vsel %vm129_vm0, %v128_v14, 0.0  ;;  %v131_v17 = vadd.f32 %v130_v15, %v125_v11  ;;  %v146_v29 = vld [vmem:[%s229_s3] sm:$0x1]  ;;  %v149_v30 = vld [vmem:[%s229_s3 + $0x1] sm:$0x1] }
   0x9   :  { %v139_v18 = vadd.f32 %v138_v16, %v127_v13 }
   0xa   :  { %v132_v19 = vrot.slane %v131_v17, 4 }
   0xb   :  { %v140_v20 = vrot.slane %v139_v18, 4 }
   0xc   :  { %v133_v21 = vadd.f32 %v132_v19, %v131_v17 }
   0xd   :  { %v141_v22 = vadd.f32 %v140_v20, %v139_v18 }
   0xe   :  { %v134_v23 = vrot.slane %v133_v21, 2 }
   0xf   :  { %v142_v24 = vrot.slane %v141_v22, 2 }
  0x10   :  { %v135_v25 = vadd.f32 %v134_v23, %v133_v21 }
  0x11   :  { %v143_v26 = vadd.f32 %v142_v24, %v141_v22 }
  0x12   :  { %v136_v27 = vrot.slane %v135_v25, 1 }
  0x13   :  { %v144_v28 = vrot.slane %v143_v26, 1 }
  0x14   :  { %v137_v31 = vadd.f32 %v136_v27, %v135_v25 }
  0x15   :  { %v145_v32 = vadd.f32 %v144_v28, %v143_v26 }
  0x16   :  { %v147_v33 = vadd.f32 %v146_v29, %v137_v31 }
  0x17   :  { %v150_v34 = vadd.f32 %v149_v30, %v145_v32 }
  0x18   :  { %148 = vst [vmem:[%s229_s3] sm:$0x1] %v147_v33 }
  0x19   :  { %151 = vst [vmem:[%s229_s3 + $0x1] sm:$0x1] %v150_v34 }

// kernel: run.3
= control target key start
LH: loop header
LB: loop body
LE: loop exit
PB: predicated region body
PF: predicated region fallthrough
CT: control target
= control target key end

     0   :  { %vm248_vm0 = vcmask 261120   ;;  %vm55_vm1 = vcmask 1041408   ;;  %vm459_vm2 = vcmask 74752   ;;  %v954_v46 = vmov 269488144   ;;  %s1415_s0 = inlined_call_operand.vmem [shape: f32[2,256], index: 0, kind: input, shape index: {}]   ;;  %s1416_s1 = inlined_call_operand.vmem [shape: f32[2,256], index: 1, kind: input, shape index: {}]   ;;  %s1417_s4 = inlined_call_operand.vmem [shape: f32[16,32], index: 4, kind: input, shape index: {}]   ;;  %s1418_s3 = inlined_call_operand.vmem [shape: f32[16,32], index: 3, kind: input, shape index: {}]   ;;  %s1419_s8 = inlined_call_operand.vmem [shape: f32[2,10], index: 8, kind: input, shape index: {}]   ;;  %s1420_s7 = inlined_call_operand.vmem [shape: f32[2,10], index: 7, kind: input, shape index: {}]   ;;  %s1421_s5 = inlined_call_operand.<no memory space> [shape: f32[1,1], index: 5, kind: input, shape index: {}]   ;;  %s1422_s11 = inlined_call_operand.vmem [shape: f32[2,64], index: 11, kind: input, shape index: {}]   ;;  %s1423_s2 = inlined_call_operand.vmem [shape: f32[2,256], index: 2, kind: input, shape index: {}]   ;;  %s1424_s6 = inlined_call_operand.vmem [shape: s32[2,1], index: 6, kind: input, shape index: {}]   ;;  %s1425_s9 = inlined_call_operand.vmem [shape: f32[2,10], index: 9, kind: input, shape index: {}]   ;;  %s1426_s10 = inlined_call_operand.vmem [shape: f32[2,64], index: 10, kind: input, shape index: {}]   ;;  %s1427_s12 = inlined_call_operand.vmem [shape: f32[1,128], index: 12, kind: output, shape index: {}]  }
   0x1   :  { %v1030_v0 = vld [vmem:[%s1415_s0] sm:$0xf]  ;;  %v1040_v2 = vld [vmem:[%s1417_s4 + $0x8] sm:$0xff]  ;;  %v106_v47 = vunpack.c.l.s4 %v954_v46 }
   0x2   :  { %v1035_v1 = vld [vmem:[%s1416_s1] sm:$0xf]  ;;  %v281_v4 = vmul.f32 %v1040_v2, %v1040_v2  ;;  %v1057_v9 = vld [vmem:[%s1418_s3 + $0x8] sm:$0xff]  ;;  %v81_v12 = vmul.f32 %v1030_v0, %v1030_v0 }
   0x3   :  { %v47_v3 = vsub.f32 %v1030_v0, %v1035_v1  ;;  %v1049_v5 = vld [vmem:[%s1418_s3] sm:$0xff]  ;;  %v247_v11 = vmul.f32 %v1057_v9, %v1057_v9  ;;  %v1106_v55 = vunpack.c.0.s8 %v106_v47  ;;  %v955_v47 = vmov 0  }
   0x4   :  { %v246_v6 = vmul.f32 %v1049_v5, %v1049_v5  ;;  %v285_v8 = vsel %vm248_vm0, %v281_v4, 0.0  ;;  %v1074_v21 = vld [vmem:[%s1417_s4] sm:$0xff]  ;;  %896 = vset.pattern.permute.xlu2 %v955_v47  ;;  %897 = vset.pattern.permute.xlu0 %v955_v47 }
   0x5   :  { %v48_v7 = vmul.f32 %v47_v3, %v47_v3  ;;  %286 = vadd.xlane.f32.xlu1 %v285_v8  ;;  %v252_v13 = vsel %vm248_vm0, %v247_v11, 0.0  ;;  %v280_v22 = vmul.f32 %v1074_v21, %v1074_v21  ;;  %v1100_v45 = vld [vmem:[%s1419_s8] sm:$0x3] }
   0x6   :  { %v249_v10 = vsel %vm248_vm0, %v246_v6, 0.0  ;;  %v543_v49 = vsel %vm459_vm2, %v1100_v45, -inf  ;;  %v1186_v3 = vld [vmem:[%s1422_s11] sm:$0x3] }
   0x7   :  { %50 = vst [vmem:[#allocation1] ss:$4 sm:$0xff] %v48_v7  ;;  %250 = vadd.xlane.f32.xlu2 %v249_v10  ;;  %v282_v23 = vsel %vm248_vm0, %v280_v22, 0.0 }
   0xe   :  { %v1065_v14 = vld.sshfl [vmem:[#allocation1] sm:$0xff pattern:$0x73625140]  ;;  %v1067_v15 = vld.sshfl [vmem:[#allocation1 + $0x8] sm:$0xff pattern:$0x73625140] }
   0xf   :  { %83 = vst [vmem:[#allocation1] ss:$4 sm:$0xff] %v81_v12  ;;  %253 = vadd.xlane.f32.xlu2 %v252_v13 }
  0x16   :  { %v84_v16 = vld.sshfl [vmem:[#allocation1] sm:$0xff pattern:$0x73625140]  ;;  %v85_v17 = vld.sshfl [vmem:[#allocation1 + $0x8] sm:$0xff pattern:$0x73625140] }
  0x17   :  { %v88_v18 = vsel %vm55_vm1, %v84_v16, 0.0  ;;  %v89_v19 = vsel %vm55_vm1, %v85_v17, 0.0  ;;  %544 = vmax.xlane.f32.xlu2 %v543_v49 }
  0x18   :  { %v90_v20 = vadd.f32 %v89_v19, %v88_v18  ;;  %v119_v19 = vmul.f32 %v1035_v1, %v1035_v1 }
  0x1a   :  { %91 = vadd.xlane.f32.xlu0 %v90_v20 }
  0x22   :  { %283 = vadd.xlane.f32.xlu0 %v282_v23 }
  0x78   :  { %v287_v25 = vpop.xlane.xlu1 %286 }
  0x79   :  { %v289_v26 = vmax.f32 %v287_v25, 1e-24 }
  0x7a   :  { %v251_v24 = vpop.xlane.xlu2 %250 }
  0x7b   :  { %898 = vrsqrt.f32 %v289_v26  ;;  %v1079_v28 = vmax.f32 %v251_v24, 1e-24  ;;  %vm306_vm4 = vweird.f32 %v289_v26 }
  0x7d   :  { %900 = vrsqrt.f32 %v1079_v28  ;;  %vm263_vm11 = vweird.f32 %v1079_v28 }
  0x81   :  { %v1084_v31 = vpop.eup %898 }
  0x82   :  { %v254_v27 = vpop.xlane.xlu2 %253  ;;  %v301_v33 = vmul.f32 %v1084_v31, %v289_v26  ;;  %vm307_vm5 = vweird.f32 %v1084_v31 }
  0x83   :  { %v1081_v29 = vmax.f32 %v254_v27, 1e-24  ;;  %v1088_v34 = vpop.eup %900  ;;  %vm1111_vm8 = vmor %vm306_vm4, %vm307_vm5  ;;  %vm340_vm5 = vcmask 130048  }
  0x84   :  { %v302_v36 = vmul.f32 %v1084_v31, %v301_v33  ;;  %v258_v39 = vmul.f32 %v1088_v34, %v1079_v28  ;;  %vm264_vm12 = vweird.f32 %v1088_v34 }
  0x85   :  { %902 = vrsqrt.f32 %v1081_v29  ;;  %vm273_vm13 = vweird.f32 %v1081_v29 }
  0x86   :  { %v303_v44 = vmul.f32 0.5, %v302_v36  ;;  %v259_v48 = vmul.f32 %v1088_v34, %v258_v39 }
  0x88   :  { %v304_v53 = vsub.f32 1.5, %v303_v44  ;;  %v260_v56 = vmul.f32 0.5, %v259_v48 }
  0x8a   :  { %v305_v62 = vmul.f32 %v1084_v31, %v304_v53  ;;  %v261_v4 = vsub.f32 1.5, %v260_v56 }
  0x8b   :  { %v1090_v35 = vpop.eup %902 }
  0x8c   :  { %v268_v42 = vmul.f32 %v1090_v35, %v1081_v29  ;;  %vm274_vm14 = vweird.f32 %v1090_v35  ;;  %v309_v11 = vsel %vm1111_vm8, %v1084_v31, %v305_v62  ;;  %v262_v12 = vmul.f32 %v1088_v34, %v261_v4 }
  0x8d   :  { %v92_v30 = vpop.xlane.xlu0 %91  ;;  %vm275_vm4 = vmor %vm273_vm13, %vm274_vm14  ;;  %v311_v17 = vmul.f32 %v309_v11, %v1040_v2 }
  0x8e   :  { %v93_v32 = vmax.f32 %v92_v30, 1e-24  ;;  %v269_v51 = vmul.f32 %v1090_v35, %v268_v42  ;;  %v333_v42 = vstv %s1421_s5 }
  0x90   :  { %904 = vrsqrt.f32 %v93_v32  ;;  %vm100_vm6 = vweird.f32 %v93_v32  ;;  %v270_v59 = vmul.f32 0.5, %v269_v51 }
  0x92   :  { %v271_v7 = vsub.f32 1.5, %v270_v59 }
  0x95   :  { %v284_v37 = vpop.xlane.xlu0 %283 }
  0x96   :  { %v905_v38 = vpop.eup %904  ;;  %v288_v40 = vmax.f32 %v284_v37, 1e-24  ;;  %v43_v37 = vlaneseq }
  0x97   :  { %v95_v41 = vmul.f32 %v905_v38, %v93_v32  ;;  %vm101_vm3 = vweird.f32 %v905_v38 }
  0x98   :  { %906 = vrsqrt.f32 %v288_v40  ;;  %vm102_vm7 = vmor %vm100_vm6, %vm101_vm3  ;;  %vm296_vm9 = vweird.f32 %v288_v40  ;;  %v1157_v39 = vand.u32 127, %v43_v37 }
  0x99   :  { %v96_v43 = vmul.f32 %v905_v38, %v95_v41  ;;  %vm1124_vm3 = vmor %vm263_vm11, %vm264_vm12 }
  0x9a   :  { %v266_v22 = vsel %vm1124_vm3, %v1088_v34, %v262_v12 }
  0x9b   :  { %v97_v50 = vmul.f32 0.5, %v96_v43  ;;  %v277_v2 = vmul.f32 %v266_v22, %v1049_v5  ;;  %v1151_v5 = vld [vmem:[%s1420_s7] sm:$0x3] }
  0x9d   :  { %v98_v52 = vsub.f32 1.5, %v97_v50 }
  0x9e   :  { %v907_v54 = vpop.eup %906 }
  0x9f   :  { %v99_v57 = vmul.f32 %v905_v38, %v98_v52  ;;  %v291_v58 = vmul.f32 %v907_v54, %v288_v40  ;;  %vm297_vm10 = vweird.f32 %v907_v54 }
  0xa0   :  { %vm298_vm15 = vmor %vm296_vm9, %vm297_vm10  ;;  %vm676_vm9 = vcmask 517120  }
  0xa1   :  { %v103_v60 = vsel %vm102_vm7, %v905_v38, %v99_v57  ;;  %v292_v61 = vmul.f32 %v907_v54, %v291_v58  ;;  %v1155_v38 = vpop.xlane.xlu2 %544 }
  0xa2   :  { %v108_v63 = vperm.slane %v103_v60, %v1106_v55 }
  0xa3   :  { %v293_v6 = vmul.f32 0.5, %v292_v61 }
  0xa4   :  { %v110_v8 = vmul.f32 %v108_v63, %v1030_v0  ;;  %v272_v0 = vmul.f32 %v1090_v35, %v271_v7 }
  0xa5   :  { %v294_v10 = vsub.f32 1.5, %v293_v6 }
  0xa6   :  { %112 = vst [vmem:[#allocation1] ss:$4 sm:$0xff] %v110_v8  ;;  %v276_v23 = vsel %vm275_vm4, %v1090_v35, %v272_v0  ;;  %v684_v8 = vmul.f32 %v1186_v3, %v1186_v3 }
  0xa7   :  { %v295_v16 = vmul.f32 %v907_v54, %v294_v10  ;;  %v278_v29 = vmul.f32 %v276_v23, %v1057_v9  ;;  %v460_v9 = vsel %vm459_vm2, %v1151_v5, -inf  ;;  %v187_v23 = vshrl.u32 %v43_v37, 7 }
  0xa8   :  { %v685_v13 = vsel %vm676_vm9, %v684_v8, 0.0 }
  0xa9   :  { %v299_v18 = vsel %vm298_vm15, %v907_v54, %v295_v16  ;;  %vm1211_vm11 = vcmp.eq.s32.totalorder %v187_v23, %v1157_v39 }
  0xaa   :  { %v310_v20 = vmul.f32 %v299_v18, %v1074_v21  ;;  %v279_v21 = vpack.c.bf16 %v278_v29, %v277_v2  ;;  %v336_v29 = vadd.s32 8, %v187_v23 }
  0xac   :  { %v312_v24 = vpack.c.bf16 %v311_v17, %v310_v20  ;;  %vm337_vm10 = vcmp.eq.s32.totalorder %v336_v29, %v1157_v39 }
  0xad   :  { %v113_v25 = vld.sshfl [vmem:[#allocation1] sm:$0xff pattern:$0x73625140]  ;;  %v1137_v26 = vld.sshfl [vmem:[#allocation1 + $0x8] sm:$0xff pattern:$0x73625140] }
  0xae   :  { %v317_v27 = vsel %vm248_vm0, %v312_v24, 0  ;;  %v1140_v28 = vpack.c.bf16 %v113_v25, %v113_v25  ;;  %121 = vst [vmem:[#allocation1] ss:$4 sm:$0xff] %v119_v19  ;;  %v118_v22 = vpack.c.bf16 %v1137_v26, %v1137_v26 }
  0xaf   :  { %326 = vmatpush.bf16.xpose.msra.mxu2 %v317_v27 }
  0xb0   :  { %770 = vmatpush.bf16.xpose.msra.mxu3 %v1140_v28 }
  0xb5   :  { %v122_v30 = vld.sshfl [vmem:[#allocation1] sm:$0xff pattern:$0x73625140]  ;;  %v123_v31 = vld.sshfl [vmem:[#allocation1 + $0x8] sm:$0xff pattern:$0x73625140] }
  0xb6   :  { %848 = vmatmul.msk.bf16.vlgmr.msra.gmra.mxu2 %vm248_vm0, %v279_v21  ;;  %v126_v32 = vsel %vm55_vm1, %v122_v30, 0.0  ;;  %v127_v33 = vsel %vm55_vm1, %v123_v31, 0.0  ;;  %vm579_vm0 = vcmp.eq.f32.partialorder %v1100_v45, %v1155_v38 }
  0xb7   :  { %v128_v34 = vadd.f32 %v127_v33, %v126_v32  ;;  %v580_v43 = vsel %vm579_vm0, %v1157_v39, 10 }
  0xb8   :  { %v1168_v50 = vsel %vm459_vm2, %v580_v43, 2147483647 }
  0xb9   :  { %129 = vadd.xlane.f32.xlu1 %v128_v34  ;;  %v583_v53 = vshra.s32 %v1168_v50, 16 }
  0xbb   :  { %v1176_v60 = vcvt.s32.f32 %v583_v53 }
  0xc1   :  { %461 = vmax.xlane.f32.xlu1 %v460_v9 }
 0x12c   :  { %v130_v35 = vpop.xlane.xlu1 %129 }
 0x12d   :  { %v131_v36 = vmax.f32 %v130_v35, 1e-24 }
 0x12f   :  { %908 = vrsqrt.f32 %v131_v36  ;;  %vm138_vm7 = vweird.f32 %v131_v36 }
 0x134   :  { %v1173_v56 = vpop.xlane.xlu1 %461 }
 0x135   :  { %v909_v40 = vpop.eup %908  ;;  %v463_v61 = vsub.f32 %v1151_v5, %v1173_v56  ;;  %vm497_vm12 = vcmp.eq.f32.partialorder %v1151_v5, %v1173_v56 }
 0x136   :  { %v133_v41 = vmul.f32 %v909_v40, %v131_v36  ;;  %vm139_vm6 = vweird.f32 %v909_v40 }
 0x137   :  { %vm140_vm8 = vmor %vm138_vm7, %vm139_vm6  ;;  %v464_v7 = vmul.f32 1.442695, %v463_v61 }
 0x138   :  { %v134_v44 = vmul.f32 %v909_v40, %v133_v41  ;;  %v1229_v41 = vld [vmem:[%s1425_s9] sm:$0x3] }
 0x139   :  { %v328_v46 = vpop.f32.mrf.mxu2  ;;  %910 = vpow2.f32 %v464_v7  ;;  %v625_v47 = vsel %vm459_vm2, %v1229_v41, -inf }
 0x13a   :  { %v135_v48 = vmul.f32 0.5, %v134_v44  ;;  %v1165_v49 = vmul.f32 %v333_v42, %v328_v46 }
 0x13c   :  { %v136_v51 = vsub.f32 1.5, %v135_v48  ;;  %v347_v52 = vsel %vm340_vm5, %v1165_v49, -inf }
 0x13d   :  { %348 = vmax.xlane.f32.xlu1 %v347_v52 }
 0x13e   :  { %v137_v54 = vmul.f32 %v909_v40, %v136_v51 }
 0x13f   :  { %v911_v24 = vpop.eup %910 }
 0x140   :  { %v141_v57 = vsel %vm140_vm8, %v909_v40, %v137_v54  ;;  %v466_v2 = vsel %vm459_vm2, %v911_v24, 0.0  ;;  %v1224_v40 = vld [vmem:[%s1424_s6] sm:$0x3] }
 0x141   :  { %v146_v58 = vperm.slane %v141_v57, %v1106_v55  ;;  %v330_v59 = vpop.f32.mrf.mxu2 }
 0x142   :  { %v1180_v62 = vmul.f32 %v333_v42, %v330_v59  ;;  %v498_v42 = vsel %vm497_vm12, %v1157_v39, 10  ;;  %vm477_vm12 = vcmask 1024  }
 0x143   :  { %v148_v63 = vmul.f32 %v146_v58, %v1035_v1  ;;  %v1196_v1 = vld [vmem:[%s1423_s2] sm:$0xf]  ;;  %v1240_v48 = vsel %vm459_vm2, %v498_v42, 2147483647 }
 0x144   :  { %v350_v4 = vsel %vm340_vm5, %v1180_v62, -inf  ;;  %v725_v12 = vmul.f32 %v1196_v1, %v1196_v1  ;;  %v339_v37 = vsel %vm337_vm10, %v1180_v62, 0.0  ;;  %v501_v57 = vshra.s32 %v1240_v48, 16 }
 0x145   :  { %150 = vst [vmem:[#allocation1] ss:$4 sm:$0xff] %v148_v63  ;;  %586 = vmin.xlane.f32.xlu1 %v1176_v60  ;;  %351 = vmax.xlane.f32.xlu2 %v350_v4  ;;  %v402_v6 = vmax.f32 %v347_v52, %v350_v4  ;;  %v344_v43 = vsel %vm340_vm5, %v339_v37, 0.0 }
 0x146   :  { %v1246_v63 = vcvt.s32.f32 %v501_v57 }
 0x147   :  { %v403_v10 = vrot.slane %v402_v6, 4 }
 0x149   :  { %v404_v11 = vmax.f32 %v402_v6, %v403_v10 }
 0x14b   :  { %v405_v0 = vrot.slane %v404_v11, 2 }
 0x14c   :  { %v151_v16 = vld.sshfl [vmem:[#allocation1] sm:$0xff pattern:$0x73625140]  ;;  %v152_v17 = vld.sshfl [vmem:[#allocation1 + $0x8] sm:$0xff pattern:$0x73625140] }
 0x14d   :  { %v406_v18 = vmax.f32 %v404_v11, %v405_v0  ;;  %686 = vadd.xlane.f32.xlu1 %v685_v13  ;;  %v155_v19 = vpack.c.bf16 %v151_v16, %v151_v16  ;;  %v156_v20 = vpack.c.bf16 %v152_v17, %v152_v17  ;;  %727 = vst [vmem:[#allocation1] ss:$4 sm:$0xff] %v725_v12 }
 0x14e   :  { %v546_v0 = vsub.f32 %v1100_v45, %v1155_v38 }
 0x14f   :  { %v407_v25 = vrot.slane %v406_v18, 1  ;;  %164 = vmatpush.bf16.xpose.msra.mxu0 %v155_v19  ;;  %177 = vmatpush.bf16.xpose.msra.mxu1 %v156_v20 }
 0x150   :  { %v547_v19 = vmul.f32 1.442695, %v546_v0 }
 0x151   :  { %v408_v27 = vmax.f32 %v406_v18, %v407_v25 }
 0x153   :  { %v409_v21 = vsub.f32 %v1165_v49, %v408_v27  ;;  %v410_v30 = vsub.f32 %v1180_v62, %v408_v27 }
 0x154   :  { %v728_v31 = vld.sshfl [vmem:[#allocation1] sm:$0xff pattern:$0x73625140]  ;;  %v729_v32 = vld.sshfl [vmem:[#allocation1 + $0x8] sm:$0xff pattern:$0x73625140] }
 0x155   :  { %v411_v33 = vmul.f32 1.442695, %v409_v21  ;;  %v413_v34 = vmul.f32 1.442695, %v410_v30  ;;  %467 = vadd.xlane.f32.xlu1 %v466_v2  ;;  %v732_v26 = vsel %vm55_vm1, %v728_v31, 0.0  ;;  %v733_v9 = vsel %vm55_vm1, %v729_v32, 0.0 }
 0x156   :  { %165 = vmatmul.bf16.vlgmr.msra.gmra.mxu0 %v1140_v28  ;;  %178 = vmatmul.bf16.vlgmr.msra.gmra.mxu1 %v118_v22  ;;  %v734_v35 = vadd.f32 %v733_v9, %v732_v26  ;;  %v338_v28 = vsel %vm1211_vm11, %v1165_v49, 0.0  ;;  %v673_v2 = vld [vmem:[%s1426_s10] sm:$0x3]  ;;  %v582_v26 = vand.u32 65535, %v1168_v50 }
 0x157   :  { %783 = vmatpush.bf16.xpose.msrb.mxu0 %v118_v22  ;;  %912 = vpow2.f32 %v411_v33  ;;  %v1234_v44 = vsel %vm340_vm5, %v338_v28, 0.0  ;;  %v680_v29 = vmul.f32 %v673_v2, %v673_v2  ;;  %v675_v28 = vmul.f32 %v1186_v3, %v673_v2 }
 0x158   :  { %914 = vpow2.f32 %v413_v34  ;;  %735 = vadd.xlane.f32.xlu0 %v734_v35  ;;  %v395_v53 = vadd.f32 %v344_v43, %v1234_v44  ;;  %v584_v9 = vcvt.s32.f32 %v582_v26 }
 0x159   :  { %v677_v42 = vsel %vm676_vm9, %v675_v28, 0.0 }
 0x15a   :  { %v396_v61 = vrot.slane %v395_v53, 4 }
 0x15c   :  { %v397_v7 = vadd.f32 %v396_v61, %v395_v53 }
 0x15d   :  { %v913_v46 = vpop.eup %912  ;;  %456 = vperm.xlu2 %896, %v1224_v40  }
 0x15e   :  { %v915_v51 = vpop.eup %914  ;;  %v415_v52 = vsel %vm340_vm5, %v913_v46, 0.0  ;;  %v398_v11 = vrot.slane %v397_v7, 2 }
 0x15f   :  { %v416_v54 = vsel %vm340_vm5, %v915_v51, 0.0 }
 0x160   :  { %626 = vmax.xlane.f32.xlu0 %v625_v47  ;;  %v417_v58 = vadd.f32 %v416_v54, %v415_v52  ;;  %v399_v13 = vadd.f32 %v398_v11, %v397_v7 }
 0x162   :  { %v418_v59 = vrot.slane %v417_v58, 4  ;;  %v400_v16 = vrot.slane %v399_v13, 1 }
 0x164   :  { %v419_v4 = vadd.f32 %v418_v59, %v417_v58  ;;  %v1251_v20 = vadd.f32 %v400_v16, %v399_v13 }
 0x166   :  { %v420_v6 = vrot.slane %v419_v4, 2 }
 0x168   :  { %504 = vmin.xlane.f32.xlu0 %v1246_v63  ;;  %v421_v8 = vadd.f32 %v420_v6, %v419_v4 }
 0x16a   :  { %v422_v10 = vrot.slane %v421_v8, 1 }
 0x16c   :  { %v423_v12 = vadd.f32 %v422_v10, %v421_v8 }
 0x16e   :  { %916 = vlog2.f32 %v423_v12 }
 0x16f   :  { %918 = vpow2.f32 %v547_v19  ;;  %v500_v19 = vand.u32 65535, %v1240_v48 }
 0x174   :  { %v917_v17 = vpop.eup %916 }
 0x175   :  { %v425_v18 = vmul.f32 0.6931472, %v917_v17  ;;  %v919_v24 = vpop.eup %918 }
 0x176   :  { %v549_v25 = vsel %vm459_vm2, %v919_v24, 0.0 }
 0x177   :  { %v1253_v22 = vadd.f32 %v425_v18, %v408_v27  ;;  %v681_v27 = vsel %vm676_vm9, %v680_v29, 0.0 }
 0x178   :  { %682 = vadd.xlane.f32.xlu0 %v681_v27 }
 0x179   :  { %v427_v23 = vsub.f32 %v1253_v22, %v1251_v20 }
 0x186   :  { %550 = vadd.xlane.f32.xlu2 %v549_v25 }
 0x1b0   :  { %v1261_v21 = vpop.xlane.xlu1 %348 }
 0x1b1   :  { %v353_v30 = vsub.f32 %v1165_v49, %v1261_v21 }
 0x1b3   :  { %v355_v31 = vmul.f32 1.442695, %v353_v30 }
 0x1b5   :  { %920 = vpow2.f32 %v355_v31 }
 0x1b8   :  { %v1267_v34 = vpop.xlane.xlu1 %586  ;;  %v1275_v3 = vpop.xlane.xlu2 %351 }
 0x1b9   :  { %vm588_vm13 = vcmp.eq.f32.partialorder %v1176_v60, %v1267_v34  ;;  %v354_v7 = vsub.f32 %v1180_v62, %v1275_v3 }
 0x1ba   :  { %v589_v37 = vsel %vm588_vm13, %v584_v9, inf }
 0x1bb   :  { %v921_v32 = vpop.eup %920  ;;  %v357_v12 = vmul.f32 1.442695, %v354_v7 }
 0x1bc   :  { %v359_v33 = vsel %vm340_vm5, %v921_v32, 0.0 }
 0x1bd   :  { %360 = vadd.xlane.f32.xlu1 %v359_v33 }
 0x1c0   :  { %v457_v24 = vpop.permute.xlu2 %456  ;;  %v687_v27 = vpop.xlane.xlu1 %686 }
 0x1c1   :  { %vm458_vm0 = vcmp.eq.s32.totalorder %v1157_v39, %v457_v24 }
 0x1c2   :  { %v472_v25 = vsel %vm458_vm0, %v1151_v5, 0.0  ;;  %v555_v29 = vsel %vm458_vm0, %v1100_v45, 0.0  ;;  %v56_v5 = vsel %vm55_vm1, %v1065_v14, 0.0  ;;  %v57_v45 = vsel %vm55_vm1, %v1067_v15, 0.0 }
 0x1c3   :  { %v473_v2 = vsel %vm459_vm2, %v472_v25, 0.0  ;;  %v556_v30 = vsel %vm459_vm2, %v555_v29, 0.0  ;;  %v58_v26 = vadd.f32 %v57_v45, %v56_v5  ;;  %v956_v29 = vmov 0.0  }
 0x1c4   :  { %vm206_vm0 = vcmask 9216  }
 0x1c5   :  { %345 = vadd.xlane.f32.xlu1 %v344_v43 }
 0x1c8   :  { %v468_v9 = vpop.xlane.xlu1 %467 }
 0x1cb   :  { %v736_v35 = vpop.xlane.xlu0 %735 }
 0x1cc   :  { %v737_v49 = vmax.f32 %v736_v35, 1e-24 }
 0x1cd   :  { %590 = vmin.xlane.f32.xlu1 %v589_v37 }
 0x1ce   :  { %922 = vrsqrt.f32 %v737_v49  ;;  %vm744_vm15 = vweird.f32 %v737_v49 }
 0x1d3   :  { %v166_v46 = vpop.f32.mrf.mxu0  ;;  %v179_v47 = vpop.f32.mrf.mxu1 }
 0x1d4   :  { %v923_v43 = vpop.eup %922  ;;  %v180_v51 = vadd.f32 %v179_v47, %v166_v46  ;;  %v627_v52 = vpop.xlane.xlu0 %626 }
 0x1d5   :  { %v739_v53 = vmul.f32 %v923_v43, %v737_v49  ;;  %v628_v50 = vsub.f32 %v1229_v41, %v627_v52  ;;  %678 = vadd.xlane.f32.xlu1 %v677_v42  ;;  %vm745_vm14 = vweird.f32 %v923_v43 }
 0x1d6   :  { %vm746_vm3 = vmor %vm744_vm15, %vm745_vm14 }
 0x1d7   :  { %v740_v60 = vmul.f32 %v923_v43, %v739_v53  ;;  %v629_v54 = vmul.f32 1.442695, %v628_v50 }
 0x1d9   :  { %v741_v57 = vmul.f32 0.5, %v740_v60  ;;  %924 = vpow2.f32 %v629_v54 }
 0x1da   :  { %926 = vpow2.f32 %v357_v12 }
 0x1db   :  { %v742_v58 = vsub.f32 1.5, %v741_v57  ;;  %v168_v59 = vpop.f32.mrf.mxu0  ;;  %v181_v61 = vpop.f32.mrf.mxu1 }
 0x1dc   :  { %v1287_v62 = vpop.xlane.xlu0 %504 }
 0x1dd   :  { %v743_v4 = vmul.f32 %v923_v43, %v742_v58  ;;  %vm506_vm4 = vcmp.eq.f32.partialorder %v1246_v63, %v1287_v62  ;;  %v183_v63 = vmul.f32 2.0, %v180_v51  ;;  %59 = vadd.xlane.f32.xlu1 %v58_v26  ;;  %v511_v58 = vcvt.f32.s32 %v1287_v62 }
 0x1df   :  { %v1277_v6 = vpop.eup %924  ;;  %v747_v41 = vsel %vm746_vm3, %v923_v43, %v743_v4  ;;  %v184_v31 = vsub.f32 2.0, %v183_v63 }
 0x1e0   :  { %v752_v8 = vperm.slane %v747_v41, %v1106_v55  ;;  %v631_v10 = vsel %vm459_vm2, %v1277_v6, 0.0  ;;  %v927_v18 = vpop.eup %926 }
 0x1e1   :  { %632 = vadd.xlane.f32.xlu0 %v631_v10  ;;  %v362_v55 = vsel %vm340_vm5, %v927_v18, 0.0  ;;  %vm428_vm5 = vcmask 122880   ;;  %v1300_v33 = vmax.f32 %v184_v31, 0.0 }
 0x1e2   :  { %v754_v11 = vmul.f32 %v752_v8, %v1196_v1  ;;  %v502_v1 = vcvt.s32.f32 %v500_v19  ;;  %v429_v48 = vsel %vm428_vm5, %v427_v23, 0.0  ;;  %v593_v8 = vcvt.f32.s32 %v1267_v34 }
 0x1e3   :  { %928 = vrsqrt.f32 %v1300_v33  ;;  %vm196_vm10 = vcmp.eq.f32.partialorder %v1300_v33, inf  ;;  %vm198_vm13 = vcmp.eq.f32.partialorder %v1300_v33, 0.0 }
 0x1e4   :  { %756 = vst [vmem:[#allocation1] ss:$4 sm:$0xff] %v754_v11 }
 0x1e9   :  { %342 = vadd.xlane.f32.xlu0 %v1234_v44  ;;  %v507_v44 = vsel %vm506_vm4, %v502_v1, inf  ;;  %v929_v22 = vpop.eup %928  ;;  %v594_v1 = vshll.u32 %v593_v8, 16  ;;  %vm373_vm4 = vcmask 7168  }
 0x1ea   :  { %v190_v35 = vmul.f32 %v929_v22, %v1300_v33 }
 0x1eb   :  { %v757_v13 = vld.sshfl [vmem:[#allocation1] sm:$0xff pattern:$0x73625140]  ;;  %v758_v0 = vld.sshfl [vmem:[#allocation1 + $0x8] sm:$0xff pattern:$0x73625140]  ;;  %v683_v32 = vpop.xlane.xlu0 %682 }
 0x1ec   :  { %v761_v16 = vpack.c.bf16 %v757_v13, %v757_v13  ;;  %v762_v17 = vpack.c.bf16 %v758_v0, %v758_v0  ;;  %v191_v14 = vmul.f32 %v929_v22, %v190_v35  ;;  %v688_v46 = vmul.f32 %v687_v27, %v683_v32 }
 0x1ed   :  { %v512_v0 = vshll.u32 %v511_v58, 16 }
 0x1ee   :  { %771 = vmatmul.bf16.vlgmr.msra.gmra.mxu3 %v761_v16  ;;  %784 = vmatmul.bf16.vlgmr.msrb.gmra.mxu0 %v762_v17  ;;  %v192_v15 = vmul.f32 0.5, %v191_v14  ;;  %v1310_v43 = vmax.f32 %v688_v46, 1e-16 }
 0x1f0   :  { %v193_v60 = vsub.f32 1.5, %v192_v15  ;;  %vm696_vm15 = vweird.f32 %v1310_v43 }
 0x1f1   :  { %363 = vadd.xlane.f32.xlu0 %v362_v55 }
 0x1f2   :  { %v194_v7 = vmul.f32 %v929_v22, %v193_v60 }
 0x1f4   :  { %v195_v18 = vmul.f32 %v194_v7, %v1300_v33 }
 0x1f9   :  { %508 = vmin.xlane.f32.xlu0 %v507_v44  ;;  %v551_v61 = vpop.xlane.xlu2 %550 }
 0x201   :  { %474 = vadd.xlane.f32.xlu0 %v473_v2 }
 0x209   :  { %557 = vadd.xlane.f32.xlu0 %v556_v30 }
 0x211   :  { %430 = vadd.xlane.f32.xlu0 %v429_v48  ;;  %v197_v48 = vsel %vm196_vm10, %v1300_v33, %v195_v18  ;;  %vm78_vm10 = vcmp.eq.s32.totalorder %v1157_v39, 0 }
 0x230   :  { %v361_v23 = vpop.xlane.xlu1 %360 }
 0x238   :  { %v1312_v51 = vpop.xlane.xlu1 %345 }
 0x240   :  { %v591_v17 = vpop.xlane.xlu1 %590 }
 0x241   :  { %v592_v44 = vcvt.f32.s32 %v591_v17  ;;  %v204_v17 = vsel %vm1211_vm11, %v1300_v33, 0.0 }
 0x254   :  { %v633_v20 = vpop.xlane.xlu0 %632 }
 0x255   :  { %930 = vrcp.f32 %v633_v20  ;;  %vm639_vm1 = vweird.f32 %v633_v20  ;;  %v645_v50 = vand.u32 2147483648, %v633_v20  ;;  %v643_v54 = vand.u32 2147483647, %v633_v20 }
 0x256   :  { %932 = vlog2.f32 %v468_v9 }
 0x257   :  { %934 = vrsqrt.f32 %v1310_v43  ;;  %v646_v4 = vor.u32 1.1754944e-38, %v645_v50  ;;  %vm644_vm8 = vcmp.eq.f32.partialorder %v643_v54, 8.507059e+37 }
 0x25b   :  { %v931_v49 = vpop.eup %930 }
 0x25c   :  { %v635_v37 = vmul.f32 %v931_v49, %v633_v20  ;;  %v1308_v28 = vpop.xlane.xlu0 %342  ;;  %vm640_vm6 = vweird.f32 %v931_v49  ;;  %v933_v57 = vpop.eup %932  ;;  %v595_v20 = vadd.s32 %v594_v1, %v592_v44 }
 0x25d   :  { %vm641_vm7 = vmor %vm639_vm1, %vm640_vm6  ;;  %v470_v10 = vmul.f32 0.6931472, %v933_v57  ;;  %v1317_v13 = vpop.eup %934 }
 0x25e   :  { %v636_v42 = vsub.f32 1.0, %v635_v37  ;;  %v691_v34 = vmul.f32 %v1317_v13, %v1310_v43  ;;  %vm596_vm14 = vcmp.eq.s32.totalorder %v595_v20, %v1224_v40  ;;  %vm697_vm3 = vweird.f32 %v1317_v13 }
 0x25f   :  { %v471_v24 = vadd.f32 %v470_v10, %v1173_v56  ;;  %v199_v56 = vand.u32 2147483648, %v1300_v33 }
 0x260   :  { %v637_v47 = vmul.f32 %v931_v49, %v636_v42  ;;  %v692_v45 = vmul.f32 %v1317_v13, %v691_v34 }
 0x262   :  { %v638_v53 = vadd.f32 %v931_v49, %v637_v47  ;;  %v693_v47 = vmul.f32 0.5, %v692_v45 }
 0x264   :  { %v364_v52 = vpop.xlane.xlu0 %363  ;;  %v642_v59 = vsel %vm641_vm7, %v931_v49, %v638_v53 }
 0x265   :  { %936 = vlog2.f32 %v364_v52  ;;  %v647_v12 = vsel %vm644_vm8, %v646_v4, %v642_v59  ;;  %v850_v59 = vsel %vm596_vm14, 1.0, %v956_v29  ;;  %vm536_vm14 = vcmp.eq.s32.totalorder %v1157_v39, 3 }
 0x266   :  { %938 = vlog2.f32 %v551_v61  ;;  %v648_v62 = vmul.f32 %v1277_v6, %v647_v12 }
 0x267   :  { %940 = vlog2.f32 %v361_v23  ;;  %v200_v23 = vsel %vm198_vm13, %v199_v56, %v197_v48  ;;  %vm450_vm13 = vcmp.eq.s32.totalorder %v1157_v39, 2 }
 0x268   :  { %v851_v32 = vadd.f32 -0.1, %v648_v62  ;;  %v201_v52 = vsub.f32 0.5, %v200_v23 }
 0x26a   :  { %v650_v46 = vmul.f32 %v851_v32, %v851_v32  ;;  %v202_v61 = vmax.f32 %v201_v52, 0.0  ;;  %v957_v32 = vmov 512.0   ;;  %v959_v52 = vmov 16.0  }
 0x26b   :  { %v785_v41 = vpop.f32.mrf.mxu0  ;;  %v937_v19 = vpop.eup %936 }
 0x26c   :  { %v509_v11 = vpop.xlane.xlu0 %508  ;;  %v939_v6 = vpop.eup %938  ;;  %v368_v63 = vmul.f32 0.6931472, %v937_v19  ;;  %v651_v60 = vsel %vm459_vm2, %v650_v46, 0.0  ;;  %v203_v8 = vsel %vm1211_vm11, 0.0, %v202_v61  ;;  %vm698_vm2 = vmor %vm696_vm15, %vm697_vm3  ;;  %v217_v19 = vsel %vm206_vm0, %v204_v17, 0.0 }
 0x26d   :  { %v510_v16 = vcvt.f32.s32 %v509_v11  ;;  %v941_v5 = vpop.eup %940  ;;  %v553_v35 = vmul.f32 0.6931472, %v939_v6  ;;  %v205_v11 = vmul.f32 %v203_v8, %v203_v8  ;;  %v958_v46 = vmov 4.0  }
 0x26e   :  { %v366_v37 = vmul.f32 0.6931472, %v941_v5  ;;  %v370_v42 = vadd.f32 %v368_v63, %v1275_v3  ;;  %v694_v3 = vsub.f32 1.5, %v693_v47  ;;  %vm539_vm15 = vcmp.eq.s32.totalorder %v1157_v39, 4 }
 0x26f   :  { %v513_v55 = vadd.s32 %v512_v0, %v510_v16  ;;  %v554_v54 = vadd.f32 %v553_v35, %v1155_v38  ;;  %v679_v0 = vpop.xlane.xlu1 %678  ;;  %v207_v62 = vsel %vm206_vm0, %v205_v11, 0.0  ;;  %vm618_vm3 = vcmp.eq.s32.totalorder %v1157_v39, 5 }
 0x270   :  { %v369_v50 = vadd.f32 %v366_v37, %v1261_v21  ;;  %v372_v57 = vsub.f32 %v370_v42, %v1312_v51  ;;  %v599_v21 = vsel %vm477_vm12, %v850_v59, 0.0  ;;  %v695_v51 = vmul.f32 %v1317_v13, %v694_v3 }
 0x271   :  { %v772_v25 = vpop.f32.mrf.mxu3  ;;  %vm514_vm9 = vcmp.eq.s32.totalorder %v513_v55, %v1224_v40 }
 0x272   :  { %v786_v2 = vadd.f32 %v785_v41, %v772_v25  ;;  %v849_v30 = vsel %vm514_vm9, 1.0, %v956_v29  ;;  %v371_v4 = vsub.f32 %v369_v50, %v1308_v28  ;;  %v375_v38 = vsel %vm373_vm4, %v372_v57, 0.0 }
 0x273   :  { %v787_v27 = vpop.f32.mrf.mxu0  ;;  %v517_v31 = vsel %vm477_vm12, %v849_v30, 0.0  ;;  %v699_v16 = vsel %vm698_vm2, %v1317_v13, %v695_v51  ;;  %v961_v51 = vmov 20.0   ;;  %vm670_vm2 = vcmp.eq.s32.totalorder %v1157_v39, 7 }
 0x274   :  { %v789_v26 = vmul.f32 2.0, %v786_v2  ;;  %518 = vadd.xlane.f32.xlu2 %v517_v31  ;;  %v475_v9 = vpop.xlane.xlu0 %474  ;;  %v374_v28 = vsel %vm373_vm4, %v371_v4, 0.0  ;;  %v700_v55 = vmul.f32 %v699_v16, %v679_v0  ;;  %vm621_vm4 = vcmp.eq.s32.totalorder %v1157_v39, 6 }
 0x275   :  { %v476_v22 = vsub.f32 %v471_v24, %v475_v9  ;;  %v376_v43 = vadd.f32 %v375_v38, %v374_v28 }
 0x276   :  { %v790_v49 = vsub.f32 2.0, %v789_v26  ;;  %v701_v13 = vsub.f32 1.0, %v700_v55 }
 0x277   :  { %v478_v14 = vsel %vm477_vm12, %v476_v22, 0.0  ;;  %v60_v56 = vpop.xlane.xlu1 %59 }
 0x278   :  { %v791_v15 = vmax.f32 %v790_v49, 0.0  ;;  %479 = vadd.xlane.f32.xlu1 %v478_v14  ;;  %v702_v30 = vsel %vm477_vm12, %v701_v13, 0.0  ;;  %v61_v5 = vrot.slane %v60_v56, 4 }
 0x279   :  { %v774_v53 = vpop.f32.mrf.mxu3 }
 0x27a   :  { %942 = vrsqrt.f32 %v791_v15  ;;  %v807_v34 = vsel %vm1211_vm11, %v791_v15, 0.0  ;;  %vm799_vm5 = vcmp.eq.f32.partialorder %v791_v15, inf  ;;  %v802_v33 = vand.u32 2147483648, %v791_v15 }
 0x27b   :  { %v819_v44 = vsel %vm206_vm0, %v807_v34, 0.0  ;;  %vm801_vm1 = vcmp.eq.f32.partialorder %v791_v15, 0.0  ;;  %944 = vrcp.f32 %v957_v32  ;;  %v62_v45 = vadd.f32 %v61_v5, %v60_v56 }
 0x27c   :  { %652 = vadd.xlane.f32.xlu2 %v651_v60  ;;  %v558_v58 = vpop.xlane.xlu0 %557  ;;  %946 = vrcp.f32 %v958_v46 }
 0x27d   :  { %v559_v7 = vsub.f32 %v554_v54, %v558_v58  ;;  %v63_v9 = vrot.slane %v62_v45, 2  ;;  %948 = vrcp.f32 %v959_v52  ;;  %v960_v54 = vmov 2.0  }
 0x27e   :  { %950 = vrcp.f32 %v960_v54 }
 0x27f   :  { %v560_v40 = vsel %vm477_vm12, %v559_v7, 0.0  ;;  %v64_v23 = vadd.f32 %v63_v9, %v62_v45  ;;  %952 = vrcp.f32 %v961_v51  ;;  %vm238_vm12 = vcmp.eq.s32.totalorder %v1157_v39, 1 }
 0x280   :  { %v943_v41 = vpop.eup %942  ;;  %561 = vadd.xlane.f32.xlu0 %v560_v40  ;;  %600 = vadd.xlane.f32.xlu1 %v599_v21 }
 0x281   :  { %v793_v10 = vmul.f32 %v943_v41, %v791_v15  ;;  %v945_v26 = vpop.eup %944  ;;  %v65_v49 = vrot.slane %v64_v23, 1 }
 0x282   :  { %v69_v20 = vmul.f32 512.0, %v945_v26  ;;  %vm73_vm6 = vweird.f32 %v945_v26  ;;  %v1359_v50 = vpop.eup %946 }
 0x283   :  { %v794_v12 = vmul.f32 %v943_v41, %v793_v10  ;;  %v66_v42 = vadd.f32 %v65_v49, %v64_v23  ;;  %v1361_v57 = vpop.eup %948  ;;  %v229_v59 = vmul.f32 4.0, %v1359_v50 }
 0x284   :  { %377 = vadd.xlane.f32.xlu2 %v376_v43  ;;  %v70_v22 = vsub.f32 1.0, %v69_v20  ;;  %v431_v47 = vpop.xlane.xlu0 %430  ;;  %v387_v4 = vmul.f32 16.0, %v1361_v57  ;;  %v1365_v38 = vpop.eup %950  ;;  %vm391_vm7 = vweird.f32 %v1361_v57 }
 0x285   :  { %v795_v18 = vmul.f32 0.5, %v794_v12  ;;  %852 = vpush %v66_v42  ;;  %v432_v60 = vrot.slane %v431_v47, 4  ;;  %v230_v21 = vsub.f32 1.0, %v229_v59  ;;  %v1369_v13 = vpop.eup %952  ;;  %vm493_vm8 = vweird.f32 %v1365_v38 }
 0x286   :  { %v71_v35 = vmul.f32 %v945_v26, %v70_v22  ;;  %v388_v43 = vsub.f32 1.0, %v387_v4  ;;  %vm666_vm9 = vweird.f32 %v1369_v13 }
 0x287   :  { %v796_v1 = vsub.f32 1.5, %v795_v18  ;;  %v433_v61 = vadd.f32 %v432_v60, %v431_v47  ;;  %v231_v17 = vmul.f32 %v1359_v50, %v230_v21  ;;  %v489_v18 = vmul.f32 2.0, %v1365_v38 }
 0x288   :  { %208 = vadd.xlane.f32.xlu0 %v207_v62  ;;  %218 = vadd.xlane.f32.xlu1 %v217_v19  ;;  %v72_v37 = vadd.f32 %v945_v26, %v71_v35 }
 0x289   :  { %v797_v24 = vmul.f32 %v943_v41, %v796_v1  ;;  %v434_v28 = vrot.slane %v433_v61, 2 }
 0x28a   :  { %v74_v36 = vsel %vm73_vm6, %v945_v26, %v72_v37  ;;  %v662_v26 = vmul.f32 20.0, %v1369_v13 }
 0x28b   :  { %v798_v25 = vmul.f32 %v797_v24, %v791_v15  ;;  %854 = vpush %v74_v36 }
 0x28c   :  { %820 = vadd.xlane.f32.xlu2 %v819_v44  ;;  %v663_v60 = vsub.f32 1.0, %v662_v26 }
 0x28d   :  { %v800_v2 = vsel %vm799_vm5, %v791_v15, %v798_v25  ;;  %vm840_vm5 = vcmp.eq.s32.totalorder %v1157_v39, 9 }
 0x28e   :  { %v803_v29 = vsel %vm801_vm1, %v802_v33, %v800_v2  ;;  %v389_v33 = vmul.f32 %v1361_v57, %v388_v43  ;;  %v435_v2 = vadd.f32 %v434_v28, %v433_v61  ;;  %v664_v43 = vmul.f32 %v1369_v13, %v663_v60 }
 0x28f   :  { %v804_v48 = vsub.f32 0.5, %v803_v29 }
 0x290   :  { %703 = vadd.xlane.f32.xlu0 %v702_v30  ;;  %v390_v23 = vadd.f32 %v1361_v57, %v389_v33 }
 0x291   :  { %v805_v6 = vmax.f32 %v804_v48, 0.0 }
 0x292   :  { %v392_v4 = vsel %vm391_vm7, %v1361_v57, %v390_v23 }
 0x293   :  { %v806_v63 = vsel %vm1211_vm11, 0.0, %v805_v6  ;;  %v232_v6 = vadd.f32 %v1359_v50, %v231_v17  ;;  %vm233_vm11 = vweird.f32 %v1359_v50 }
 0x294   :  { %v808_v27 = vmul.f32 %v806_v63, %v806_v63  ;;  %v490_v63 = vsub.f32 1.0, %v489_v18 }
 0x295   :  { %v234_v61 = vsel %vm233_vm11, %v1359_v50, %v232_v6 }
 0x296   :  { %v809_v31 = vsel %vm206_vm0, %v808_v27, 0.0  ;;  %v491_v42 = vmul.f32 %v1365_v38, %v490_v63  ;;  %vm721_vm0 = vcmp.eq.s32.totalorder %v1157_v39, 8 }
 0x297   :  { %810 = vadd.xlane.f32.xlu1 %v809_v31 }
 0x298   :  { %v492_v51 = vadd.f32 %v1365_v38, %v491_v42 }
 0x2b6   :  { %s853_s10 = spop %852 }
 0x2bc   :  { %s855_s20 = spop %854 }
 0x2bd   :  { %s76_s21 = smul.f32 %s855_s20, %s853_s10 }
 0x2bf   :  { %s77_s26 = smul.f32 0.5, %s76_s21 }
 0x2e7   :  { %v519_v14 = vpop.xlane.xlu2 %518 }
 0x2e8   :  { %v520_v8 = vrot.slane %v519_v14, 4 }
 0x2ea   :  { %v521_v1 = vadd.f32 %v520_v8, %v519_v14 }
 0x2eb   :  { %v480_v15 = vpop.xlane.xlu1 %479 }
 0x2ec   :  { %v481_v7 = vrot.slane %v480_v15, 4  ;;  %v522_v56 = vrot.slane %v521_v1, 2 }
 0x2ee   :  { %v482_v11 = vadd.f32 %v481_v7, %v480_v15  ;;  %v436_v7 = vrot.slane %v435_v2, 1 }
 0x2ef   :  { %v653_v53 = vpop.xlane.xlu2 %652 }
 0x2f0   :  { %v654_v34 = vrot.slane %v653_v53, 4  ;;  %v483_v29 = vrot.slane %v482_v11, 2 }
 0x2f2   :  { %v655_v5 = vadd.f32 %v654_v34, %v653_v53  ;;  %v484_v37 = vadd.f32 %v483_v29, %v482_v11  ;;  %v523_v53 = vadd.f32 %v522_v56, %v521_v1  ;;  %v665_v1 = vadd.f32 %v1369_v13, %v664_v43 }
 0x2f3   :  { %v562_v3 = vpop.xlane.xlu0 %561  ;;  %v601_v58 = vpop.xlane.xlu1 %600 }
 0x2f4   :  { %v563_v12 = vrot.slane %v562_v3, 4  ;;  %v602_v55 = vrot.slane %v601_v58, 4  ;;  %v656_v15 = vrot.slane %v655_v5, 2 }
 0x2f6   :  { %v564_v30 = vadd.f32 %v563_v12, %v562_v3  ;;  %v603_v27 = vadd.f32 %v602_v55, %v601_v58  ;;  %v524_v12 = vrot.slane %v523_v53, 1  ;;  %v494_v55 = vsel %vm493_vm8, %v1365_v38, %v492_v51 }
 0x2f7   :  { %v378_v40 = vpop.xlane.xlu2 %377  ;;  %v667_v38 = vsel %vm666_vm9, %v1369_v13, %v665_v1  ;;  %v79_v13 = vstv %s77_s26 }
 0x2f8   :  { %v379_v41 = vrot.slane %v378_v40, 4  ;;  %v565_v35 = vrot.slane %v564_v30, 2  ;;  %v604_v36 = vrot.slane %v603_v27, 2 }
 0x2fa   :  { %v380_v10 = vadd.f32 %v379_v41, %v378_v40  ;;  %v566_v40 = vadd.f32 %v565_v35, %v564_v30  ;;  %v485_v41 = vrot.slane %v484_v37, 1  ;;  %v605_v8 = vadd.f32 %v604_v36, %v603_v27 }
 0x2fb   :  { %v209_v0 = vpop.xlane.xlu0 %208  ;;  %v219_v16 = vpop.xlane.xlu1 %218 }
 0x2fc   :  { %v210_v62 = vrot.slane %v209_v0, 4  ;;  %v220_v19 = vrot.slane %v219_v16, 4  ;;  %v381_v24 = vrot.slane %v380_v10, 2  ;;  %v486_v18 = vadd.f32 %v485_v41, %v484_v37 }
 0x2fe   :  { %v211_v44 = vadd.f32 %v210_v62, %v209_v0  ;;  %v221_v25 = vadd.f32 %v220_v19, %v219_v16  ;;  %v382_v45 = vadd.f32 %v381_v24, %v380_v10  ;;  %v657_v10 = vadd.f32 %v656_v15, %v655_v5 }
 0x2ff   :  { %v821_v48 = vpop.xlane.xlu2 %820  ;;  %v437_v0 = vadd.f32 %v436_v7, %v435_v2  ;;  %v567_v16 = vrot.slane %v566_v40, 1  ;;  %v606_v62 = vrot.slane %v605_v8, 1  ;;  %v80_v5 = vsel %vm78_vm10, %v79_v13, 0.0 }
 0x300   :  { %v212_v31 = vrot.slane %v211_v44, 2  ;;  %v222_v32 = vrot.slane %v221_v25, 2  ;;  %v822_v9 = vrot.slane %v821_v48, 4  ;;  %v383_v52 = vrot.slane %v382_v45, 1 }
 0x301   :  { %v658_v19 = vrot.slane %v657_v10, 1  ;;  %v568_v33 = vadd.f32 %v567_v16, %v566_v40  ;;  %v607_v29 = vadd.f32 %v606_v62, %v605_v8 }
 0x302   :  { %v213_v20 = vadd.f32 %v212_v31, %v211_v44  ;;  %v223_v22 = vadd.f32 %v222_v32, %v221_v25  ;;  %v823_v54 = vadd.f32 %v822_v9, %v821_v48  ;;  %v384_v28 = vadd.f32 %v383_v52, %v382_v45 }
 0x303   :  { %v704_v49 = vpop.xlane.xlu0 %703  ;;  %v525_v25 = vadd.f32 %v524_v12, %v523_v53  ;;  %v659_v30 = vadd.f32 %v658_v19, %v657_v10 }
 0x304   :  { %v705_v14 = vrot.slane %v704_v49, 4  ;;  %v214_v46 = vrot.slane %v213_v20, 1  ;;  %v224_v47 = vrot.slane %v223_v22, 1  ;;  %v824_v50 = vrot.slane %v823_v54, 2 }
 0x306   :  { %v706_v3 = vadd.f32 %v705_v14, %v704_v49  ;;  %v215_v58 = vadd.f32 %v214_v46, %v213_v20  ;;  %v225_v59 = vadd.f32 %v224_v47, %v223_v22  ;;  %v825_v44 = vadd.f32 %v824_v50, %v823_v54 }
 0x308   :  { %v707_v21 = vrot.slane %v706_v3, 2  ;;  %856 = vpush %v215_v58  ;;  %v826_v63 = vrot.slane %v825_v44, 1 }
 0x309   :  { %858 = vpush %v225_v59 }
 0x30a   :  { %v708_v11 = vadd.f32 %v707_v21, %v706_v3  ;;  %860 = vpush %v234_v61  ;;  %v811_v57 = vpop.xlane.xlu1 %810  ;;  %v827_v32 = vadd.f32 %v826_v63, %v825_v44 }
 0x30b   :  { %862 = vpush %v384_v28  ;;  %v812_v17 = vrot.slane %v811_v57, 4 }
 0x30c   :  { %864 = vpush %v392_v4  ;;  %v709_v24 = vrot.slane %v708_v11, 1 }
 0x30d   :  { %866 = vpush %v437_v0  ;;  %v813_v34 = vadd.f32 %v812_v17, %v811_v57 }
 0x30e   :  { %868 = vpush %v486_v18  ;;  %v710_v6 = vadd.f32 %v709_v24, %v708_v11 }
 0x30f   :  { %870 = vpush %v494_v55  ;;  %v814_v2 = vrot.slane %v813_v34, 2 }
 0x310   :  { %872 = vpush %v525_v25 }
 0x311   :  { %874 = vpush %v568_v33  ;;  %v815_v48 = vadd.f32 %v814_v2, %v813_v34 }
 0x312   :  { %876 = vpush %v607_v29 }
 0x313   :  { %878 = vpush %v659_v30  ;;  %v816_v27 = vrot.slane %v815_v48, 1 }
 0x314   :  { %880 = vpush %v667_v38 }
 0x315   :  { %882 = vpush %v710_v6  ;;  %v817_v31 = vadd.f32 %v816_v27, %v815_v48 }
 0x317   :  { %884 = vpush %v817_v31 }
 0x318   :  { %886 = vpush %v827_v32 }
 0x339   :  { %s857_s22 = spop %856 }
 0x33a   :  { %s859_s23 = spop %858 }
 0x33b   :  { %s227_s24 = sadd.f32 %s859_s23, %s857_s22  ;;  %s1391_s25 = spop %860 }
 0x33c   :  { %s863_s27 = spop %862 }
 0x33d   :  { %s236_s0 = smul.f32 %s1391_s25, %s227_s24  ;;  %s865_s1 = spop %864 }
 0x33e   :  { %s394_s28 = smul.f32 %s865_s1, %s863_s27  ;;  %s867_s3 = spop %866 }
 0x33f   :  { %s237_s29 = smul.f32 0.5, %s236_s0  ;;  %s869_s4 = spop %868 }
 0x340   :  { %s447_s30 = smul.f32 %s867_s3, %s865_s1  ;;  %s1395_s8 = spop %870 }
 0x341   :  { %v239_v56 = vstv %s237_s29  ;;  %s873_s13 = spop %872  ;;  %s496_s7 = smul.f32 %s1395_s8, %s869_s4 }
 0x342   :  { %s448_s14 = sadd.f32 %s447_s30, %s394_s28  ;;  %s535_s5 = smul.f32 %s873_s13, %s1395_s8  ;;  %v240_v45 = vsel %vm238_vm12, %v239_v56, %v80_v5 }
 0x343   :  { %s875_s15 = spop %874  ;;  %v537_v20 = vstv %s496_s7 }
 0x344   :  { %s449_s16 = smul.f32 0.5, %s448_s14  ;;  %s877_s17 = spop %876  ;;  %v540_v23 = vstv %s535_s5 }
 0x345   :  { %s578_s2 = smul.f32 %s875_s15, %s1395_s8  ;;  %s879_s11 = spop %878 }
 0x346   :  { %v451_v26 = vstv %s449_s16  ;;  %s617_s18 = smul.f32 %s877_s17, %s1395_s8  ;;  %s881_s19 = spop %880 }
 0x347   :  { %v452_v9 = vsel %vm450_vm13, %v451_v26, %v240_v45  ;;  %s883_s6 = spop %882  ;;  %s669_s9 = smul.f32 %s881_s19, %s879_s11  ;;  %v619_v49 = vstv %s578_s2 }
 0x348   :  { %v538_v22 = vsel %vm536_vm14, %v537_v20, %v452_v9  ;;  %s885_s10 = spop %884  ;;  %v622_v42 = vstv %s617_s18  ;;  %s720_s22 = smul.f32 %s883_s6, %s1395_s8 }
 0x349   :  { %v541_v35 = vsel %vm539_vm15, %v540_v23, %v538_v22  ;;  %s887_s20 = spop %886  ;;  %v671_v14 = vstv %s669_s9 }
 0x34a   :  { %v620_v37 = vsel %vm618_vm3, %v619_v49, %v541_v35  ;;  %s829_s21 = sadd.f32 %s887_s20, %s885_s10  ;;  %v722_v47 = vstv %s720_s22 }
 0x34b   :  { %v623_v36 = vsel %vm621_vm4, %v622_v42, %v620_v37 }
 0x34c   :  { %s838_s23 = smul.f32 %s1391_s25, %s829_s21  ;;  %v672_v46 = vsel %vm670_vm2, %v671_v14, %v623_v36 }
 0x34d   :  { %v723_v15 = vsel %vm721_vm0, %v722_v47, %v672_v46 }
 0x34e   :  { %s839_s24 = smul.f32 0.5, %s838_s23 }
 0x350   :  { %v841_v52 = vstv %s839_s24 }
 0x351   :  { %v842_v53 = vsel %vm840_vm5, %v841_v52, %v723_v15 }
 0x352   :  { %843 = vst [vmem:[%s1427_s12] sm:$0x1] %v842_v53 }

</bundles_post_ra>
